<compile_context>
chip_gen: v7x
topology: tpu7x:2x2x1
jax: 0.10.0
libtpu: 0.0.40
codegen_flags: <defaults>
</compile_context>

<pallas_src>
import math

import jax
import jax.numpy as jnp
from jax.experimental import pallas as pl
from jax.experimental.pallas import tpu as pltpu

# Full-f32 matmuls for BOTH the XLA reference and the Mosaic kernel.
jax.config.update("jax_default_matmul_precision", "highest")

# ----------------------------- model dims -----------------------------------
B = 2      # batch
S = 8      # sequence length
D = 32     # hidden size
F = 128    # MLP hidden size (4*D)
V = 256    # vocab size
BS = B * S
LOG2_S = int(math.log2(S))   # S is a power of two

# Row offsets inside the packed (PACK_ROWS, D) constant slab.  Every offset is
# a multiple of 8, so all in-kernel sublane slices are tile-aligned (free views).
TOK_OFF = 0
WQ_OFF = TOK_OFF + V
WK_OFF = WQ_OFF + D
WV_OFF = WK_OFF + D
WO_OFF = WV_OFF + D
W2_OFF = WO_OFF + D
POS_OFF = W2_OFF + F
LN_OFF = POS_OFF + BS
PACK_ROWS = LN_OFF + 8        # 6 LN rows + 2 pad rows -> multiple of 8


def _layernorm(x, g, b, eps=1e-5):
    mu = jnp.mean(x, axis=-1, keepdims=True)
    var = jnp.mean((x - mu) ** 2, axis=-1, keepdims=True)
    return (x - mu) * jax.lax.rsqrt(var + eps) * g + b


# ------------------------------ Pallas kernel --------------------------------
def _gen_lm_kernel(ids_ref, keep_ref, pack_ref, packw_ref, out_ref):
    """Fused: embedding gather + transformer block + LM head for all B*S rows."""
    f32 = jnp.float32

    # ---- unpack constants (all slices tile-aligned -> zero-cost views) ----
    tok_emb = pack_ref[TOK_OFF:TOK_OFF + V, :]        # (V, D)
    wq = pack_ref[WQ_OFF:WQ_OFF + D, :]               # (D, D)
    wk = pack_ref[WK_OFF:WK_OFF + D, :]
    wv = pack_ref[WV_OFF:WV_OFF + D, :]
    wo = pack_ref[WO_OFF:WO_OFF + D, :]
    w2 = pack_ref[W2_OFF:W2_OFF + F, :]               # (F, D)
    pos = pack_ref[POS_OFF:POS_OFF + BS, :]           # (BS, D)
    g1 = pack_ref[LN_OFF + 0:LN_OFF + 1, :]
    b1 = pack_ref[LN_OFF + 1:LN_OFF + 2, :]
    g2 = pack_ref[LN_OFF + 2:LN_OFF + 3, :]
    b2 = pack_ref[LN_OFF + 3:LN_OFF + 4, :]
    gf = pack_ref[LN_OFF + 4:LN_OFF + 5, :]
    bf = pack_ref[LN_OFF + 5:LN_OFF + 6, :]
    w1 = packw_ref[:, 0:F]                            # (D, F)   lane offset 0
    wlm = packw_ref[:, F:F + V]                       # (D, V)   lane offset 128

    # ---- embedding gather fused in-kernel: one-hot matmul on the idle MXU ----
    ids = ids_ref[...]                                           # (BS, 1) int32
    vocab = jax.lax.broadcasted_iota(jnp.int32, (BS, V), 1)
    onehot = (vocab == ids).astype(f32)                          # (BS, V)
    x = jnp.dot(onehot, tok_emb, preferred_element_type=f32) + pos   # (BS, D)

    # ---- single-head self-attention: flat (BS, BS) block-diagonal causal ----
    h = _layernorm(x, g1, b1)
    q = jnp.dot(h, wq, preferred_element_type=f32)
    k = jnp.dot(h, wk, preferred_element_type=f32)
    v = jnp.dot(h, wv, preferred_element_type=f32)

    # contract last dims directly (no explicit k transpose through the XLU)
    scores = jax.lax.dot_general(q, k, (((1,), (1,)), ((), ())),
                                 preferred_element_type=f32)
    scores = scores * (1.0 / jnp.sqrt(f32(D)))

    rows = jax.lax.broadcasted_iota(jnp.int32, (BS, BS), 0)
    cols = jax.lax.broadcasted_iota(jnp.int32, (BS, BS), 1)
    same_batch = jnp.right_shift(rows, LOG2_S) == jnp.right_shift(cols, LOG2_S)
    struct = jnp.logical_and(same_batch, cols <= rows).astype(f32)   # (BS, BS)
    keep = keep_ref[...].astype(f32)                                 # (1, BS)
    allow = struct * keep                                            # key mask bcast over rows
    scores = scores + (1.0 - allow) * f32(-1e9)

    scores = scores - jnp.max(scores, axis=-1, keepdims=True)
    p = jnp.exp(scores)
    p = p / jnp.sum(p, axis=-1, keepdims=True)        # exact divide (parity-safe)

    attn = jnp.dot(p, v, preferred_element_type=f32)                 # (BS, D)
    x = x + jnp.dot(attn, wo, preferred_element_type=f32)

    # ---- MLP ----
    h2 = _layernorm(x, g2, b2)
    m = jax.nn.gelu(jnp.dot(h2, w1, preferred_element_type=f32), approximate=True)
    x = x + jnp.dot(m, w2, preferred_element_type=f32)

    # ---- final LN + LM head (lane-dense (BS, V) store) ----
    hf = _layernorm(x, gf, bf)
    out_ref[...] = jnp.dot(hf, wlm, preferred_element_type=f32)


# ----------------------- one-time parameter packing --------------------------
def pack_params(params):
    """Hoisted out of the per-call path: build the two packed operand slabs once."""
    pos_flat = jnp.tile(params["pos_emb"], (B, 1))                   # (BS, D)
    pack = jnp.concatenate(
        [params["tok_emb"], params["wq"], params["wk"], params["wv"],
         params["wo"], params["w2"], pos_flat,
         params["g1"], params["b1"], params["g2"], params["b2"],
         params["gf"], params["bf"],
         jnp.zeros((2, D), jnp.float32)],                            # pad to PACK_ROWS
        axis=0).astype(jnp.float32)
    assert pack.shape == (PACK_ROWS, D)
    packw = jnp.concatenate([params["w1"], params["wlm"]], axis=1).astype(jnp.float32)
    assert packw.shape == (D, F + V)
    return pack, packw


_COST = pl.CostEstimate(
    flops=950_000,          # one-hot gather + qkv + attn + wo + mlp + lm-head
    transcendentals=2_400,  # exp / tanh(gelu) / rsqrt
    bytes_accessed=140_000, # packed weights + logits + tiny per-call inputs
)


@jax.jit
def generator_forward(input_ids, attention_mask, pack, packw):
    """GeneratorNetwork.forward: base_model(input_ids, attention_mask) -> logits."""
    # Only free reshapes in the wrapper; gather/cast/masking all happen in-kernel.
    ids2d = input_ids.reshape(BS, 1).astype(jnp.int32)               # (BS, 1)
    keep = attention_mask.reshape(1, BS).astype(jnp.int32)           # (1, BS)

    full2d = lambda i: (0, 0)
    grid_spec = pltpu.PrefetchScalarGridSpec(
        num_scalar_prefetch=0,
        grid=(1,),  # single fused step — kernel is overhead-bound, not compute-bound
        in_specs=[
            pl.BlockSpec((BS, 1), full2d),          # token ids
            pl.BlockSpec((1, BS), full2d),          # attention keep mask (keys)
            pl.BlockSpec((PACK_ROWS, D), full2d),   # tok_emb|wq|wk|wv|wo|w2|pos|LN
            pl.BlockSpec((D, F + V), full2d),       # w1 | wlm
        ],
        out_specs=pl.BlockSpec((BS, V), full2d),
    )

    logits = pl.pallas_call(
        _gen_lm_kernel,
        out_shape=jax.ShapeDtypeStruct((BS, V), jnp.float32),
        grid_spec=grid_spec,
        compiler_params=pltpu.CompilerParams(dimension_semantics=("arbitrary",)),
        cost_estimate=_COST,
    )(ids2d, keep, pack, packw)
    return logits.reshape(B, S, V)


# ---------------------- pure-JAX reference for sanity ------------------------
def _reference(input_ids, attention_mask, params):
    x = jnp.take(params["tok_emb"], input_ids, axis=0) + params["pos_emb"][None]
    causal = jnp.tril(jnp.ones((S, S), jnp.float32))
    keep = attention_mask.astype(jnp.float32)[:, None, :]
    bias = (1.0 - causal[None] * keep) * jnp.float32(-1e9)

    def ln(t, g, b):
        mu = jnp.mean(t, -1, keepdims=True)
        var = jnp.mean((t - mu) ** 2, -1, keepdims=True)
        return (t - mu) * jax.lax.rsqrt(var + 1e-5) * g + b

    h = ln(x, params["g1"], params["b1"])
    q = h @ params["wq"]; k = h @ params["wk"]; v = h @ params["wv"]
    sc = jnp.einsum("bqd,bkd->bqk", q, k) / jnp.sqrt(jnp.float32(D)) + bias
    p = jax.nn.softmax(sc, axis=-1)
    x = x + jnp.einsum("bqk,bkd->bqd", p, v) @ params["wo"]
    h2 = ln(x, params["g2"], params["b2"])
    x = x + jax.nn.gelu(h2 @ params["w1"], approximate=True) @ params["w2"]
    return ln(x, params["gf"], params["bf"]) @ params["wlm"]


def _init_params(key):
    ks = jax.random.split(key, 9)
    s = 0.02
    return {
        "tok_emb": s * jax.random.normal(ks[0], (V, D), jnp.float32),
        "pos_emb": s * jax.random.normal(ks[1], (S, D), jnp.float32),
        "wq": s * jax.random.normal(ks[2], (D, D), jnp.float32),
        "wk": s * jax.random.normal(ks[3], (D, D), jnp.float32),
        "wv": s * jax.random.normal(ks[4], (D, D), jnp.float32),
        "wo": s * jax.random.normal(ks[5], (D, D), jnp.float32),
        "w1": s * jax.random.normal(ks[6], (D, F), jnp.float32),
        "w2": s * jax.random.normal(ks[7], (F, D), jnp.float32),
        "wlm": s * jax.random.normal(ks[8], (D, V), jnp.float32),
        "g1": jnp.ones((1, D), jnp.float32), "b1": jnp.zeros((1, D), jnp.float32),
        "g2": jnp.ones((1, D), jnp.float32), "b2": jnp.zeros((1, D), jnp.float32),
        "gf": jnp.ones((1, D), jnp.float32), "bf": jnp.zeros((1, D), jnp.float32),
    }


if __name__ == "__main__":
    key = jax.random.PRNGKey(0)
    k_ids, k_params = jax.random.split(key)

    input_ids = jax.random.randint(k_ids, (B, S), 0, V, dtype=jnp.int32)
    attention_mask = jnp.ones((B, S), jnp.int32).at[1, 6:].set(0)  # pad tail of sample 1
    params = _init_params(k_params)
    pack, packw = pack_params(params)          # hoisted: packed once, reused per call

    logits = generator_forward(input_ids, attention_mask, pack, packw)
    jax.block_until_ready(logits)

    ref = _reference(input_ids, attention_mask, params)
    assert logits.shape == (B, S, V)
    max_err = float(jnp.max(jnp.abs(logits - ref)))
    assert jnp.allclose(logits, ref, atol=1e-3, rtol=1e-3), (
        f"mismatch vs JAX reference (max abs err {max_err:.3e})")

    # TODO(synk): GeneratorNetwork.generate (autoregressive sampling loop) is
    # host-side control flow, not a single kernel; only forward() is kernelized.
    print("KERNEL_OK")
</pallas_src>

<mosaic_0001>
module attributes {stable_mosaic.version = 11 : i64} {
  func.func @_gen_lm_kernel(%arg0: i32, %arg1: memref<16x1xi32, #tpu.memory_space<vmem>>, %arg2: memref<1x16xi32, #tpu.memory_space<vmem>>, %arg3: memref<536x32xf32, #tpu.memory_space<vmem>>, %arg4: memref<32x384xf32, #tpu.memory_space<vmem>>, %arg5: memref<16x256xf32, #tpu.memory_space<vmem>>) attributes {dimension_semantics = [#tpu.dimension_semantics<arbitrary>], iteration_bounds = array<i64: 1>, scalar_prefetch = 0 : i64, scratch_operands = 0 : i64, tpu.core_type = #tpu.core_type<tc>, window_params = [{pipeline_mode = #tpu.pipeline_mode<synchronous>, transform_indices = @transform_0, window_bounds = array<i64: 16, 1>}, {pipeline_mode = #tpu.pipeline_mode<synchronous>, transform_indices = @transform_1, window_bounds = array<i64: 1, 16>}, {pipeline_mode = #tpu.pipeline_mode<synchronous>, transform_indices = @transform_2, window_bounds = array<i64: 536, 32>}, {pipeline_mode = #tpu.pipeline_mode<synchronous>, transform_indices = @transform_3, window_bounds = array<i64: 32, 384>}, {pipeline_mode = #tpu.pipeline_mode<synchronous>, transform_indices = @transform_4, window_bounds = array<i64: 16, 256>}]} {
    %c0 = arith.constant 0 : index
    %c0_0 = arith.constant 0 : index
    %0 = vector.load %arg3[%c0, %c0_0] : memref<536x32xf32, #tpu.memory_space<vmem>>, vector<256x32xf32>
    %c256 = arith.constant 256 : index
    %c0_1 = arith.constant 0 : index
    %1 = vector.load %arg3[%c256, %c0_1] : memref<536x32xf32, #tpu.memory_space<vmem>>, vector<32x32xf32>
    %c288 = arith.constant 288 : index
    %c0_2 = arith.constant 0 : index
    %2 = vector.load %arg3[%c288, %c0_2] : memref<536x32xf32, #tpu.memory_space<vmem>>, vector<32x32xf32>
    %c320 = arith.constant 320 : index
    %c0_3 = arith.constant 0 : index
    %3 = vector.load %arg3[%c320, %c0_3] : memref<536x32xf32, #tpu.memory_space<vmem>>, vector<32x32xf32>
    %c352 = arith.constant 352 : index
    %c0_4 = arith.constant 0 : index
    %4 = vector.load %arg3[%c352, %c0_4] : memref<536x32xf32, #tpu.memory_space<vmem>>, vector<32x32xf32>
    %c384 = arith.constant 384 : index
    %c0_5 = arith.constant 0 : index
    %5 = vector.load %arg3[%c384, %c0_5] : memref<536x32xf32, #tpu.memory_space<vmem>>, vector<128x32xf32>
    %c512 = arith.constant 512 : index
    %c0_6 = arith.constant 0 : index
    %6 = vector.load %arg3[%c512, %c0_6] : memref<536x32xf32, #tpu.memory_space<vmem>>, vector<16x32xf32>
    %c528 = arith.constant 528 : index
    %c0_7 = arith.constant 0 : index
    %7 = vector.load %arg3[%c528, %c0_7] : memref<536x32xf32, #tpu.memory_space<vmem>>, vector<1x32xf32>
    %c529 = arith.constant 529 : index
    %c0_8 = arith.constant 0 : index
    %8 = vector.load %arg3[%c529, %c0_8] : memref<536x32xf32, #tpu.memory_space<vmem>>, vector<1x32xf32>
    %c530 = arith.constant 530 : index
    %c0_9 = arith.constant 0 : index
    %9 = vector.load %arg3[%c530, %c0_9] : memref<536x32xf32, #tpu.memory_space<vmem>>, vector<1x32xf32>
    %c531 = arith.constant 531 : index
    %c0_10 = arith.constant 0 : index
    %10 = vector.load %arg3[%c531, %c0_10] : memref<536x32xf32, #tpu.memory_space<vmem>>, vector<1x32xf32>
    %c532 = arith.constant 532 : index
    %c0_11 = arith.constant 0 : index
    %11 = vector.load %arg3[%c532, %c0_11] : memref<536x32xf32, #tpu.memory_space<vmem>>, vector<1x32xf32>
    %c533 = arith.constant 533 : index
    %c0_12 = arith.constant 0 : index
    %12 = vector.load %arg3[%c533, %c0_12] : memref<536x32xf32, #tpu.memory_space<vmem>>, vector<1x32xf32>
    %c0_13 = arith.constant 0 : index
    %c0_14 = arith.constant 0 : index
    %13 = vector.load %arg4[%c0_13, %c0_14] : memref<32x384xf32, #tpu.memory_space<vmem>>, vector<32x128xf32>
    %c0_15 = arith.constant 0 : index
    %c128 = arith.constant 128 : index
    %14 = vector.load %arg4[%c0_15, %c128] : memref<32x384xf32, #tpu.memory_space<vmem>>, vector<32x256xf32>
    %c0_16 = arith.constant 0 : index
    %c0_17 = arith.constant 0 : index
    %15 = vector.load %arg1[%c0_16, %c0_17] : memref<16x1xi32, #tpu.memory_space<vmem>>, vector<16x1xi32>
    %16 = tpu.iota {dimensions = array<i32: 1>} : vector<16x256xi32>
    %17 = vector.broadcast %15 : vector<16x1xi32> to vector<16x256xi32>
    %18 = arith.cmpi eq, %16, %17 : vector<16x256xi32>
    %19 = arith.extui %18 : vector<16x256xi1> to vector<16x256xi32>
    %20 = arith.sitofp %19 : vector<16x256xi32> to vector<16x256xf32>
    %cst = arith.constant dense<0.000000e+00> : vector<16x32xf32>
    %21 = tpu.matmul %20, %0, %cst {dimension_numbers = #tpu.dot_dimension_numbers<[1], [0], [0], [1], [0, 0, 1, 1], [], []>, precision = #tpu.contract_precision<fp32>} : vector<16x256xf32>, vector<256x32xf32>, vector<16x32xf32> -> vector<16x32xf32>
    %22 = arith.addf %21, %6 : vector<16x32xf32>
    %cst_18 = arith.constant dense<0.000000e+00> : vector<16xf32>
    %23 = vector.multi_reduction <add>, %22, %cst_18 [1] : vector<16x32xf32> to vector<16xf32>
    %24 = vector.shape_cast %23 : vector<16xf32> to vector<16x1xf32>
    %cst_19 = arith.constant 3.200000e+01 : f32
    %25 = vector.broadcast %cst_19 : f32 to vector<16x1xf32>
    %26 = arith.divf %24, %25 : vector<16x1xf32>
    %27 = vector.broadcast %26 : vector<16x1xf32> to vector<16x32xf32>
    %28 = arith.subf %22, %27 : vector<16x32xf32>
    %29 = arith.mulf %28, %28 : vector<16x32xf32>
    %cst_20 = arith.constant dense<0.000000e+00> : vector<16xf32>
    %30 = vector.multi_reduction <add>, %29, %cst_20 [1] : vector<16x32xf32> to vector<16xf32>
    %31 = vector.shape_cast %30 : vector<16xf32> to vector<16x1xf32>
    %cst_21 = arith.constant 3.200000e+01 : f32
    %32 = vector.broadcast %cst_21 : f32 to vector<16x1xf32>
    %33 = arith.divf %31, %32 : vector<16x1xf32>
    %34 = vector.broadcast %26 : vector<16x1xf32> to vector<16x32xf32>
    %35 = arith.subf %22, %34 : vector<16x32xf32>
    %cst_22 = arith.constant 9.99999974E-6 : f32
    %36 = vector.broadcast %cst_22 : f32 to vector<16x1xf32>
    %37 = arith.addf %33, %36 : vector<16x1xf32>
    %38 = math.rsqrt %37 : vector<16x1xf32>
    %39 = vector.broadcast %38 : vector<16x1xf32> to vector<16x32xf32>
    %40 = arith.mulf %35, %39 : vector<16x32xf32>
    %41 = vector.broadcast %7 : vector<1x32xf32> to vector<16x32xf32>
    %42 = arith.mulf %40, %41 : vector<16x32xf32>
    %43 = vector.broadcast %8 : vector<1x32xf32> to vector<16x32xf32>
    %44 = arith.addf %42, %43 : vector<16x32xf32>
    %cst_23 = arith.constant dense<0.000000e+00> : vector<16x32xf32>
    %45 = tpu.matmul %44, %1, %cst_23 {dimension_numbers = #tpu.dot_dimension_numbers<[1], [0], [0], [1], [0, 0, 1, 1], [], []>, precision = #tpu.contract_precision<fp32>} : vector<16x32xf32>, vector<32x32xf32>, vector<16x32xf32> -> vector<16x32xf32>
    %cst_24 = arith.constant dense<0.000000e+00> : vector<16x32xf32>
    %46 = tpu.matmul %44, %2, %cst_24 {dimension_numbers = #tpu.dot_dimension_numbers<[1], [0], [0], [1], [0, 0, 1, 1], [], []>, precision = #tpu.contract_precision<fp32>} : vector<16x32xf32>, vector<32x32xf32>, vector<16x32xf32> -> vector<16x32xf32>
    %cst_25 = arith.constant dense<0.000000e+00> : vector<16x32xf32>
    %47 = tpu.matmul %44, %3, %cst_25 {dimension_numbers = #tpu.dot_dimension_numbers<[1], [0], [0], [1], [0, 0, 1, 1], [], []>, precision = #tpu.contract_precision<fp32>} : vector<16x32xf32>, vector<32x32xf32>, vector<16x32xf32> -> vector<16x32xf32>
    %cst_26 = arith.constant dense<0.000000e+00> : vector<16x16xf32>
    %48 = tpu.matmul %45, %46, %cst_26 {dimension_numbers = #tpu.dot_dimension_numbers<[1], [1], [0], [0], [0, 0, 1, 0], [], []>, precision = #tpu.contract_precision<fp32>} : vector<16x32xf32>, vector<16x32xf32>, vector<16x16xf32> -> vector<16x16xf32>
    %cst_27 = arith.constant 3.200000e+01 : f32
    %49 = math.sqrt %cst_27 : f32
    %cst_28 = arith.constant 1.000000e+00 : f32
    %50 = arith.divf %cst_28, %49 : f32
    %51 = vector.broadcast %50 : f32 to vector<16x16xf32>
    %52 = arith.mulf %48, %51 : vector<16x16xf32>
    %53 = tpu.iota {dimensions = array<i32: 0>} : vector<16x16xi32>
    %54 = tpu.iota {dimensions = array<i32: 1>} : vector<16x16xi32>
    %c3_i32 = arith.constant 3 : i32
    %55 = vector.broadcast %c3_i32 : i32 to vector<16x16xi32>
    %56 = arith.shrsi %53, %55 : vector<16x16xi32>
    %c3_i32_29 = arith.constant 3 : i32
    %57 = vector.broadcast %c3_i32_29 : i32 to vector<16x16xi32>
    %58 = arith.shrsi %54, %57 : vector<16x16xi32>
    %59 = arith.cmpi eq, %56, %58 : vector<16x16xi32>
    %60 = arith.cmpi sle, %54, %53 : vector<16x16xi32>
    %61 = arith.andi %59, %60 : vector<16x16xi1>
    %62 = arith.extui %61 : vector<16x16xi1> to vector<16x16xi32>
    %63 = arith.sitofp %62 : vector<16x16xi32> to vector<16x16xf32>
    %c0_30 = arith.constant 0 : index
    %c0_31 = arith.constant 0 : index
    %64 = vector.load %arg2[%c0_30, %c0_31] : memref<1x16xi32, #tpu.memory_space<vmem>>, vector<1x16xi32>
    %65 = arith.sitofp %64 : vector<1x16xi32> to vector<1x16xf32>
    %66 = vector.broadcast %65 : vector<1x16xf32> to vector<16x16xf32>
    %67 = arith.mulf %63, %66 : vector<16x16xf32>
    %cst_32 = arith.constant 1.000000e+00 : f32
    %68 = vector.broadcast %cst_32 : f32 to vector<16x16xf32>
    %69 = arith.subf %68, %67 : vector<16x16xf32>
    %cst_33 = arith.constant -1.000000e+09 : f32
    %70 = vector.broadcast %cst_33 : f32 to vector<16x16xf32>
    %71 = arith.mulf %69, %70 : vector<16x16xf32>
    %72 = arith.addf %52, %71 : vector<16x16xf32>
    %cst_34 = arith.constant dense<0xFF800000> : vector<16xf32>
    %73 = vector.multi_reduction <maximumf>, %72, %cst_34 [1] : vector<16x16xf32> to vector<16xf32>
    %74 = vector.shape_cast %73 : vector<16xf32> to vector<16x1xf32>
    %75 = vector.broadcast %74 : vector<16x1xf32> to vector<16x16xf32>
    %76 = arith.subf %72, %75 : vector<16x16xf32>
    %77 = math.exp %76 : vector<16x16xf32>
    %cst_35 = arith.constant dense<0.000000e+00> : vector<16xf32>
    %78 = vector.multi_reduction <add>, %77, %cst_35 [1] : vector<16x16xf32> to vector<16xf32>
    %79 = vector.shape_cast %78 : vector<16xf32> to vector<16x1xf32>
    %80 = vector.broadcast %79 : vector<16x1xf32> to vector<16x16xf32>
    %81 = arith.divf %77, %80 : vector<16x16xf32>
    %cst_36 = arith.constant dense<0.000000e+00> : vector<16x32xf32>
    %82 = tpu.matmul %81, %47, %cst_36 {dimension_numbers = #tpu.dot_dimension_numbers<[1], [0], [0], [1], [0, 0, 1, 1], [], []>, precision = #tpu.contract_precision<fp32>} : vector<16x16xf32>, vector<16x32xf32>, vector<16x32xf32> -> vector<16x32xf32>
    %cst_37 = arith.constant dense<0.000000e+00> : vector<16x32xf32>
    %83 = tpu.matmul %82, %4, %cst_37 {dimension_numbers = #tpu.dot_dimension_numbers<[1], [0], [0], [1], [0, 0, 1, 1], [], []>, precision = #tpu.contract_precision<fp32>} : vector<16x32xf32>, vector<32x32xf32>, vector<16x32xf32> -> vector<16x32xf32>
    %84 = arith.addf %22, %83 : vector<16x32xf32>
    %cst_38 = arith.constant dense<0.000000e+00> : vector<16xf32>
    %85 = vector.multi_reduction <add>, %84, %cst_38 [1] : vector<16x32xf32> to vector<16xf32>
    %86 = vector.shape_cast %85 : vector<16xf32> to vector<16x1xf32>
    %cst_39 = arith.constant 3.200000e+01 : f32
    %87 = vector.broadcast %cst_39 : f32 to vector<16x1xf32>
    %88 = arith.divf %86, %87 : vector<16x1xf32>
    %89 = vector.broadcast %88 : vector<16x1xf32> to vector<16x32xf32>
    %90 = arith.subf %84, %89 : vector<16x32xf32>
    %91 = arith.mulf %90, %90 : vector<16x32xf32>
    %cst_40 = arith.constant dense<0.000000e+00> : vector<16xf32>
    %92 = vector.multi_reduction <add>, %91, %cst_40 [1] : vector<16x32xf32> to vector<16xf32>
    %93 = vector.shape_cast %92 : vector<16xf32> to vector<16x1xf32>
    %cst_41 = arith.constant 3.200000e+01 : f32
    %94 = vector.broadcast %cst_41 : f32 to vector<16x1xf32>
    %95 = arith.divf %93, %94 : vector<16x1xf32>
    %96 = vector.broadcast %88 : vector<16x1xf32> to vector<16x32xf32>
    %97 = arith.subf %84, %96 : vector<16x32xf32>
    %cst_42 = arith.constant 9.99999974E-6 : f32
    %98 = vector.broadcast %cst_42 : f32 to vector<16x1xf32>
    %99 = arith.addf %95, %98 : vector<16x1xf32>
    %100 = math.rsqrt %99 : vector<16x1xf32>
    %101 = vector.broadcast %100 : vector<16x1xf32> to vector<16x32xf32>
    %102 = arith.mulf %97, %101 : vector<16x32xf32>
    %103 = vector.broadcast %9 : vector<1x32xf32> to vector<16x32xf32>
    %104 = arith.mulf %102, %103 : vector<16x32xf32>
    %105 = vector.broadcast %10 : vector<1x32xf32> to vector<16x32xf32>
    %106 = arith.addf %104, %105 : vector<16x32xf32>
    %cst_43 = arith.constant dense<0.000000e+00> : vector<16x128xf32>
    %107 = tpu.matmul %106, %13, %cst_43 {dimension_numbers = #tpu.dot_dimension_numbers<[1], [0], [0], [1], [0, 0, 1, 1], [], []>, precision = #tpu.contract_precision<fp32>} : vector<16x32xf32>, vector<32x128xf32>, vector<16x128xf32> -> vector<16x128xf32>
    %108 = arith.mulf %107, %107 : vector<16x128xf32>
    %109 = arith.mulf %107, %108 : vector<16x128xf32>
    %cst_44 = arith.constant 4.471500e-02 : f32
    %110 = vector.broadcast %cst_44 : f32 to vector<16x128xf32>
    %111 = arith.mulf %110, %109 : vector<16x128xf32>
    %112 = arith.addf %107, %111 : vector<16x128xf32>
    %cst_45 = arith.constant 0.797884583 : f32
    %113 = vector.broadcast %cst_45 : f32 to vector<16x128xf32>
    %114 = arith.mulf %113, %112 : vector<16x128xf32>
    %115 = math.tanh %114 : vector<16x128xf32>
    %cst_46 = arith.constant 1.000000e+00 : f32
    %116 = vector.broadcast %cst_46 : f32 to vector<16x128xf32>
    %117 = arith.addf %116, %115 : vector<16x128xf32>
    %cst_47 = arith.constant 5.000000e-01 : f32
    %118 = vector.broadcast %cst_47 : f32 to vector<16x128xf32>
    %119 = arith.mulf %118, %117 : vector<16x128xf32>
    %120 = arith.mulf %107, %119 : vector<16x128xf32>
    %cst_48 = arith.constant dense<0.000000e+00> : vector<16x32xf32>
    %121 = tpu.matmul %120, %5, %cst_48 {dimension_numbers = #tpu.dot_dimension_numbers<[1], [0], [0], [1], [0, 0, 1, 1], [], []>, precision = #tpu.contract_precision<fp32>} : vector<16x128xf32>, vector<128x32xf32>, vector<16x32xf32> -> vector<16x32xf32>
    %122 = arith.addf %84, %121 : vector<16x32xf32>
    %cst_49 = arith.constant dense<0.000000e+00> : vector<16xf32>
    %123 = vector.multi_reduction <add>, %122, %cst_49 [1] : vector<16x32xf32> to vector<16xf32>
    %124 = vector.shape_cast %123 : vector<16xf32> to vector<16x1xf32>
    %cst_50 = arith.constant 3.200000e+01 : f32
    %125 = vector.broadcast %cst_50 : f32 to vector<16x1xf32>
    %126 = arith.divf %124, %125 : vector<16x1xf32>
    %127 = vector.broadcast %126 : vector<16x1xf32> to vector<16x32xf32>
    %128 = arith.subf %122, %127 : vector<16x32xf32>
    %129 = arith.mulf %128, %128 : vector<16x32xf32>
    %cst_51 = arith.constant dense<0.000000e+00> : vector<16xf32>
    %130 = vector.multi_reduction <add>, %129, %cst_51 [1] : vector<16x32xf32> to vector<16xf32>
    %131 = vector.shape_cast %130 : vector<16xf32> to vector<16x1xf32>
    %cst_52 = arith.constant 3.200000e+01 : f32
    %132 = vector.broadcast %cst_52 : f32 to vector<16x1xf32>
    %133 = arith.divf %131, %132 : vector<16x1xf32>
    %134 = vector.broadcast %126 : vector<16x1xf32> to vector<16x32xf32>
    %135 = arith.subf %122, %134 : vector<16x32xf32>
    %cst_53 = arith.constant 9.99999974E-6 : f32
    %136 = vector.broadcast %cst_53 : f32 to vector<16x1xf32>
    %137 = arith.addf %133, %136 : vector<16x1xf32>
    %138 = math.rsqrt %137 : vector<16x1xf32>
    %139 = vector.broadcast %138 : vector<16x1xf32> to vector<16x32xf32>
    %140 = arith.mulf %135, %139 : vector<16x32xf32>
    %141 = vector.broadcast %11 : vector<1x32xf32> to vector<16x32xf32>
    %142 = arith.mulf %140, %141 : vector<16x32xf32>
    %143 = vector.broadcast %12 : vector<1x32xf32> to vector<16x32xf32>
    %144 = arith.addf %142, %143 : vector<16x32xf32>
    %cst_54 = arith.constant dense<0.000000e+00> : vector<16x256xf32>
    %145 = tpu.matmul %144, %14, %cst_54 {dimension_numbers = #tpu.dot_dimension_numbers<[1], [0], [0], [1], [0, 0, 1, 1], [], []>, precision = #tpu.contract_precision<fp32>} : vector<16x32xf32>, vector<32x256xf32>, vector<16x256xf32> -> vector<16x256xf32>
    %c0_55 = arith.constant 0 : index
    %c0_56 = arith.constant 0 : index
    %146 = vector.load %arg5[%c0_55, %c0_56] : memref<16x256xf32, #tpu.memory_space<vmem>>, vector<16x256xf32>
    tpu.vector_store %arg5[%c0_55, %c0_56], %145 {strides = array<i32>} : memref<16x256xf32, #tpu.memory_space<vmem>>, vector<16x256xf32>,
    return
  }
  func.func @transform_0(%arg0: i32) -> (i32, i32) {
    %c0_i32 = arith.constant 0 : i32
    %c0_i32_0 = arith.constant 0 : i32
    %c0_i32_1 = arith.constant 0 : i32
    return %c0_i32, %c0_i32_0 : i32, i32
  }
  func.func @transform_1(%arg0: i32) -> (i32, i32) {
    %c0_i32 = arith.constant 0 : i32
    %c0_i32_0 = arith.constant 0 : i32
    %c0_i32_1 = arith.constant 0 : i32
    return %c0_i32, %c0_i32_0 : i32, i32
  }
  func.func @transform_2(%arg0: i32) -> (i32, i32) {
    %c0_i32 = arith.constant 0 : i32
    %c0_i32_0 = arith.constant 0 : i32
    %c0_i32_1 = arith.constant 0 : i32
    return %c0_i32, %c0_i32_0 : i32, i32
  }
  func.func @transform_3(%arg0: i32) -> (i32, i32) {
    %c0_i32 = arith.constant 0 : i32
    %c0_i32_0 = arith.constant 0 : i32
    %c0_i32_1 = arith.constant 0 : i32
    return %c0_i32, %c0_i32_0 : i32, i32
  }
  func.func @transform_4(%arg0: i32) -> (i32, i32) {
    %c0_i32 = arith.constant 0 : i32
    %c0_i32_0 = arith.constant 0 : i32
    %c0_i32_1 = arith.constant 0 : i32
    return %c0_i32, %c0_i32_0 : i32, i32
  }
}

</mosaic_0001>

<bundles_post_ra>
// kernel: generator_forward.1
= control target key start
LH: loop header
LB: loop body
LE: loop exit
PB: predicated region body
PF: predicated region fallthrough
CT: control target
= control target key end

     0   :  { %v8307_v2 = vmov 0   ;;  %s9917_s0 = inlined_call_operand.vmem [shape: s32[16,1], index: 0, kind: input, shape index: {}]   ;;  %s9918_s1 = inlined_call_operand.vmem [shape: s32[1,16], index: 1, kind: input, shape index: {}]   ;;  %s9919_s2 = inlined_call_operand.vmem [shape: f32[536,32], index: 2, kind: input, shape index: {}]   ;;  %s9920_s3 = inlined_call_operand.vmem [shape: f32[32,384], index: 3, kind: input, shape index: {}]   ;;  %s9921_s4 = inlined_call_operand.hbm [shape: f32[16,256], index: 4, kind: output, shape index: {}]  }
   0x1   :  { %v102_v0 = vld [vmem:[%s9917_s0] sm:$0xff]  ;;  %8258 = vset.pattern.permute.xlu0 %v8307_v2  ;;  %v103_v3 = vld [vmem:[%s9917_s0 + $0x8] sm:$0xff]  ;;  %v36_v11 = vld [vmem:[%s9919_s2 + $0x90] sm:$0xff] }
   0x2   :  { %v34_v1 = vld [vmem:[%s9919_s2 + $0x80] sm:$0xff]  ;;  %v8350_v4 = vld [vmem:[%s9919_s2 + $0x88] sm:$0xff]  ;;  %108 = vperm.xlu0 %8258, %v102_v0   ;;  %v37_v12 = vld [vmem:[%s9919_s2 + $0x98] sm:$0xff]  ;;  %v180_v14 = vand.u32 4294901760, %v36_v11 }
   0x3   :  { %v174_v5 = vand.u32 4294901760, %v34_v1  ;;  %v18_v6 = vld [vmem:[%s9919_s2] sm:$0xff]  ;;  %v19_v7 = vld [vmem:[%s9919_s2 + $0x8] sm:$0xff]  ;;  %v177_v8 = vand.u32 4294901760, %v8350_v4  ;;  %v20_v13 = vld [vmem:[%s9919_s2 + $0x10] sm:$0xff]  ;;  %v183_v15 = vand.u32 4294901760, %v37_v12 }
   0x4   :  { %v126_v9 = vand.u32 4294901760, %v18_v6  ;;  %v129_v10 = vand.u32 4294901760, %v19_v7  ;;  %v21_v16 = vld [vmem:[%s9919_s2 + $0x18] sm:$0xff]  ;;  %v38_v17 = vld [vmem:[%s9919_s2 + $0xa0] sm:$0xff]  ;;  %v39_v18 = vld [vmem:[%s9919_s2 + $0xa8] sm:$0xff]  ;;  %v132_v22 = vand.u32 4294901760, %v20_v13  ;;  %v8398_v28 = vsub.f32 %v36_v11, %v180_v14 }
   0x5   :  { %v8379_v19 = vpack.c.bf16 %v177_v8, %v174_v5  ;;  %v22_v23 = vld [vmem:[%s9919_s2 + $0x20] sm:$0xff]  ;;  %v23_v24 = vld [vmem:[%s9919_s2 + $0x28] sm:$0xff]  ;;  %v40_v25 = vld [vmem:[%s9919_s2 + $0xb0] sm:$0xff]  ;;  %v8396_v27 = vpack.c.bf16 %v183_v15, %v180_v14  ;;  %v8400_v29 = vsub.f32 %v37_v12, %v183_v15  ;;  %v135_v31 = vand.u32 4294901760, %v21_v16 }
   0x6   :  { %v8381_v20 = vpack.c.bf16 %v129_v10, %v126_v9  ;;  %v8383_v21 = vsub.f32 %v18_v6, %v126_v9  ;;  %v8394_v26 = vsub.f32 %v19_v7, %v129_v10  ;;  %v41_v30 = vld [vmem:[%s9919_s2 + $0xb8] sm:$0xff]  ;;  %111 = vperm.xlu0 %8258, %v103_v3   ;;  %v8406_v32 = vsub.f32 %v20_v13, %v132_v22  ;;  %v24_v39 = vld [vmem:[%s9919_s2 + $0x30] sm:$0xff]  ;;  %v42_v45 = vld [vmem:[%s9919_s2 + $0xc0] sm:$0xff] }
   0x7   :  { %9994 = vst [vmem:[#allocation5_spill] sm:$0xff] %v8379_v19  ;;  %9996 = vst [vmem:[#allocation7_spill] sm:$0xff] %v8396_v27  ;;  %7593 = vmatprep.subr.bf16.mxu1 %v8379_v19  ;;  %v186_v33 = vand.u32 4294901760, %v38_v17  ;;  %v189_v34 = vand.u32 4294901760, %v39_v18  ;;  %7433 = vmatprep.subr.bf16.mxu0 %v8379_v19  ;;  %v138_v35 = vand.u32 4294901760, %v22_v23  ;;  %v141_v36 = vand.u32 4294901760, %v23_v24 }
   0x8   :  { %9995 = vst [vmem:[#allocation6_spill] sm:$0xff] %v8381_v20  ;;  %7595 = vmatpush3.bf16.msra.mxu1 %v8381_v20  ;;  %v192_v37 = vand.u32 4294901760, %v40_v25  ;;  %v195_v38 = vand.u32 4294901760, %v41_v30  ;;  %v8414_v40 = vpack.c.bf16 %v135_v31, %v132_v22  ;;  %v8416_v41 = vsub.f32 %v21_v16, %v135_v31  ;;  %v25_v44 = vld [vmem:[%s9919_s2 + $0x38] sm:$0xff]  ;;  %7435 = vmatpush3.bf16.msra.mxu0 %v8381_v20  ;;  %v43_v49 = vld [vmem:[%s9919_s2 + $0xc8] sm:$0xff]  ;;  %v26_v50 = vld [vmem:[%s9919_s2 + $0x40] sm:$0xff] }
   0x9   :  { %7597 = vmatprep.subr.bf16.mxu1 %v8396_v27  ;;  %v8418_v42 = vpack.c.bf16 %v189_v34, %v186_v33  ;;  %v8420_v43 = vsub.f32 %v38_v17, %v186_v33  ;;  %v8428_v46 = vsub.f32 %v39_v18, %v189_v34  ;;  %v8431_v47 = vsub.f32 %v22_v23, %v138_v35  ;;  %v27_v51 = vld [vmem:[%s9919_s2 + $0x48] sm:$0xff]  ;;  %v44_v56 = vld [vmem:[%s9919_s2 + $0xd0] sm:$0xff]  ;;  %v45_v57 = vld [vmem:[%s9919_s2 + $0xd8] sm:$0xff] }
   0xa   :  { %9997 = vst [vmem:[#allocation8_spill] sm:$0xff] %v8414_v40  ;;  %v8433_v48 = vsub.f32 %v23_v24, %v141_v36  ;;  %v8444_v52 = vsub.f32 %v34_v1, %v174_v5  ;;  %7437 = vmatprep.subr.bf16.mxu0 %v8396_v27  ;;  %v8447_v53 = vsub.f32 %v40_v25, %v192_v37  ;;  %v144_v55 = vand.u32 4294901760, %v24_v39  ;;  %v28_v2 = vld [vmem:[%s9919_s2 + $0x50] sm:$0xff] }
   0xb   :  { %9998 = vst [vmem:[#allocation9_spill] sm:$0xff] %v8418_v42  ;;  %v8449_v54 = vsub.f32 %v41_v30, %v195_v38  ;;  %v8458_v58 = vpack.c.bf16 %v141_v36, %v138_v35  ;;  %v8460_v59 = vpack.c.bf16 %v195_v38, %v192_v37  ;;  %v147_v60 = vand.u32 4294901760, %v25_v44 }
   0xc   :  { %7599 = vmatpush3.bf16.msra.mxu1 %v8414_v40  ;;  %v198_v61 = vand.u32 4294901760, %v42_v45  ;;  %v8463_v62 = vsub.f32 %v24_v39, %v144_v55  ;;  %v201_v63 = vand.u32 4294901760, %v43_v49  ;;  %v150_v0 = vand.u32 4294901760, %v26_v50 }
   0xd   :  { %9999 = vst [vmem:[#allocation10_spill] sm:$0xff] %v8458_v58  ;;  %10000 = vst [vmem:[#allocation11_spill] sm:$0xff] %v8460_v59  ;;  %7601 = vmatprep.subr.bf16.mxu1 %v8418_v42  ;;  %v153_v1 = vand.u32 4294901760, %v27_v51 }
   0xe   :  { %9 = vsyncpa [#allocation3], 0  ;;  %7439 = vmatpush3.bf16.msra.mxu0 %v8414_v40  ;;  %v8469_v3 = vsub.f32 %v25_v44, %v147_v60  ;;  %v8471_v5 = vsub.f32 %v42_v45, %v198_v61  ;;  %v204_v6 = vand.u32 4294901760, %v44_v56  ;;  %v207_v7 = vand.u32 4294901760, %v45_v57  ;;  %v29_v9 = vld [vmem:[%s9919_s2 + $0x58] sm:$0xff]  ;;  %v46_v10 = vld [vmem:[%s9919_s2 + $0xe0] sm:$0xff] }
   0xf   :  { %v47_v11 = vld [vmem:[%s9919_s2 + $0xe8] sm:$0xff]  ;;  %v8485_v12 = vsub.f32 %v8350_v4, %v177_v8  ;;  %7441 = vmatprep.subr.bf16.mxu0 %v8418_v42  ;;  %v8488_v13 = vsub.f32 %v43_v49, %v201_v63  ;;  %v8490_v14 = vsub.f32 %v26_v50, %v150_v0  ;;  %v8492_v15 = vsub.f32 %v27_v51, %v153_v1  ;;  %v30_v16 = vld [vmem:[%s9919_s2 + $0x60] sm:$0xff]  ;;  %v48_v23 = vld [vmem:[%s9919_s2 + $0xf0] sm:$0xff] }
  0x10   :  { %v31_v17 = vld [vmem:[%s9919_s2 + $0x68] sm:$0xff]  ;;  %7603 = vmatpush3.bf16.msra.mxu1 %v8458_v58  ;;  %v8501_v4 = vpack.c.bf16 %v147_v60, %v144_v55  ;;  %v8503_v8 = vsub.f32 %v44_v56, %v204_v6  ;;  %v8505_v18 = vsub.f32 %v45_v57, %v207_v7  ;;  %v156_v22 = vand.u32 4294901760, %v28_v2  ;;  %v49_v24 = vld [vmem:[%s9919_s2 + $0xf8] sm:$0xff]  ;;  %v32_v49 = vld [vmem:[%s9919_s2 + $0x70] sm:$0xff] }
  0x11   :  { %7605 = vmatprep.subr.bf16.mxu1 %v8460_v59  ;;  %v8514_v25 = vpack.c.bf16 %v201_v63, %v198_v61  ;;  %v159_v30 = vand.u32 4294901760, %v29_v9  ;;  %v210_v31 = vand.u32 4294901760, %v46_v10  ;;  %v213_v33 = vand.u32 4294901760, %v47_v11  ;;  %v33_v50 = vld [vmem:[%s9919_s2 + $0x78] sm:$0xff] }
  0x12   :  { %10001 = vst [vmem:[#allocation12_spill] sm:$0xff] %v8501_v4  ;;  %7443 = vmatpush3.bf16.msra.mxu0 %v8458_v58  ;;  %v8517_v34 = vpack.c.bf16 %v153_v1, %v150_v0  ;;  %v8519_v35 = vsub.f32 %v28_v2, %v156_v22  ;;  %v162_v36 = vand.u32 4294901760, %v30_v16  ;;  %v165_v37 = vand.u32 4294901760, %v31_v17 }
  0x13   :  { %10002 = vst [vmem:[#allocation13_spill] sm:$0xff] %v8514_v25  ;;  %7445 = vmatprep.subr.bf16.mxu0 %v8460_v59  ;;  %v8522_v38 = vsub.f32 %v29_v9, %v159_v30  ;;  %v8524_v39 = vsub.f32 %v46_v10, %v210_v31  ;;  %v216_v44 = vand.u32 4294901760, %v48_v23  ;;  %v219_v45 = vand.u32 4294901760, %v49_v24 }
  0x14   :  { %10003 = vst [vmem:[#allocation14_spill] sm:$0xff] %v8517_v34  ;;  %7607 = vmatpush3.bf16.msra.mxu1 %v8501_v4  ;;  %v8533_v51 = vpack.c.bf16 %v207_v7, %v204_v6  ;;  %v8535_v55 = vsub.f32 %v47_v11, %v213_v33  ;;  %v8537_v56 = vsub.f32 %v30_v16, %v162_v36  ;;  %v168_v2 = vand.u32 4294901760, %v32_v49 }
  0x15   :  { %v8539_v57 = vsub.f32 %v31_v17, %v165_v37  ;;  %7609 = vmatprep.subr.bf16.mxu1 %v8514_v25  ;;  %v8542_v60 = vpack.c.bf16 %v159_v30, %v156_v22  ;;  %v8544_v61 = vpack.c.bf16 %v213_v33, %v210_v31  ;;  %v8546_v63 = vsub.f32 %v48_v23, %v216_v44 }
  0x16   :  { %10004 = vst [vmem:[#allocation15_spill] sm:$0xff] %v8533_v51  ;;  %v8548_v0 = vsub.f32 %v49_v24, %v219_v45  ;;  %7447 = vmatpush3.bf16.msra.mxu0 %v8501_v4  ;;  %v8551_v1 = vpack.c.bf16 %v165_v37, %v162_v36  ;;  %v171_v6 = vand.u32 4294901760, %v33_v50  ;;  %v9926_v7 = vand.u32 4294901760, %v8444_v52 }
  0x17   :  { %10005 = vst [vmem:[#allocation16_spill] sm:$0xff] %v8542_v60  ;;  %10006 = vst [vmem:[#allocation17_spill] sm:$0xff] %v8544_v61  ;;  %7449 = vmatprep.subr.bf16.mxu0 %v8514_v25  ;;  %v8555_v9 = vpack.c.bf16 %v219_v45, %v216_v44  ;;  %v9925_v10 = vand.u32 4294901760, %v8485_v12  ;;  %v9923_v11 = vand.u32 4294901760, %v8383_v21  ;;  %v9922_v16 = vand.u32 4294901760, %v8394_v26 }
  0x18   :  { %10007 = vst [vmem:[#allocation18_spill] sm:$0xff] %v8551_v1  ;;  %7611 = vmatpush3.bf16.msra.mxu1 %v8517_v34  ;;  %v8561_v17 = vpack.c.bf16 %v171_v6, %v168_v2  ;;  %v8563_v22 = vsub.f32 %v32_v49, %v168_v2  ;;  %v8565_v23 = vsub.f32 %v33_v50, %v171_v6  ;;  %v9924_v36 = vand.u32 4294901760, %v8398_v28 }
  0x19   :  { %10008 = vst [vmem:[#allocation19_spill] sm:$0xff] %v8555_v9  ;;  %v368_v24 = vsub.f32 %v8444_v52, %v9926_v7  ;;  %7613 = vmatprep.subr.bf16.mxu1 %v8533_v51  ;;  %v375_v30 = vsub.f32 %v8485_v12, %v9925_v10  ;;  %v256_v31 = vsub.f32 %v8383_v21, %v9923_v11  ;;  %v9927_v44 = vand.u32 4294901760, %v8400_v29 }
  0x1a   :  { %10009 = vst [vmem:[#allocation20_spill] sm:$0xff] %v8561_v17  ;;  %10010 = vst [vmem:[#allocation21_spill] sm:$0xff] %v8563_v22  ;;  %v263_v33 = vsub.f32 %v8394_v26, %v9922_v16  ;;  %7451 = vmatpush3.bf16.msra.mxu0 %v8517_v34  ;;  %v9930_v45 = vand.u32 4294901760, %v8406_v32  ;;  %v9933_v49 = vand.u32 4294901760, %v8416_v41  ;;  %v382_v16 = vsub.f32 %v8398_v28, %v9924_v36 }
  0x1b   :  { %v369_v37 = vand.u32 4294901760, %v368_v24  ;;  %7453 = vmatprep.subr.bf16.mxu0 %v8533_v51  ;;  %v376_v50 = vand.u32 4294901760, %v375_v30  ;;  %v257_v2 = vand.u32 4294901760, %v256_v31  ;;  %v389_v24 = vsub.f32 %v8400_v29, %v9927_v44 }
  0x1c   :  { %v264_v6 = vand.u32 4294901760, %v263_v33  ;;  %7615 = vmatpush3.bf16.msra.mxu1 %v8542_v60  ;;  %v270_v11 = vsub.f32 %v8406_v32, %v9930_v45  ;;  %v277_v30 = vsub.f32 %v8416_v41, %v9933_v49  ;;  %v9931_v31 = vand.u32 4294901760, %v8420_v43 }
  0x1d   :  { %7617 = vmatprep.subr.bf16.mxu1 %v8544_v61  ;;  %v7464_v33 = vpack.c.bf16 %v376_v50, %v369_v37  ;;  %v383_v10 = vand.u32 4294901760, %v382_v16  ;;  %v9932_v7 = vand.u32 4294901760, %v8428_v46  ;;  %v390_v44 = vand.u32 4294901760, %v389_v24 }
  0x1e   :  { %v8601_v36 = vpack.c.bf16 %v264_v6, %v257_v2  ;;  %7455 = vmatpush3.bf16.msra.mxu0 %v8542_v60  ;;  %v271_v51 = vand.u32 4294901760, %v270_v11  ;;  %v278_v34 = vand.u32 4294901760, %v277_v30  ;;  %v396_v45 = vsub.f32 %v8420_v43, %v9931_v31 }
  0x1f   :  { %7457 = vmatprep.subr.bf16.mxu0 %v8544_v61  ;;  %v403_v37 = vsub.f32 %v8428_v46, %v9932_v7  ;;  %v9935_v50 = vand.u32 4294901760, %v8431_v47  ;;  %v9934_v16 = vand.u32 4294901760, %v8433_v48  ;;  %v9937_v2 = vand.u32 4294901760, %v8447_v53 }
  0x20   :  { %7619 = vmatpush3.bf16.msra.mxu1 %v8551_v1  ;;  %v8616_v11 = vpack.c.bf16 %v390_v44, %v383_v10  ;;  %v8618_v6 = vpack.c.bf16 %v278_v34, %v271_v51  ;;  %v397_v24 = vand.u32 4294901760, %v396_v45  ;;  %v9938_v30 = vand.u32 4294901760, %v8449_v54 }
  0x21   :  { %7621 = vmatprep.subr.bf16.mxu1 %v8555_v9  ;;  %v404_v31 = vand.u32 4294901760, %v403_v37  ;;  %v284_v7 = vsub.f32 %v8431_v47, %v9935_v50  ;;  %v291_v49 = vsub.f32 %v8433_v48, %v9934_v16  ;;  %v410_v10 = vsub.f32 %v8447_v53, %v9937_v2 }
  0x22   :  { %7459 = vmatpush3.bf16.msra.mxu0 %v8551_v1  ;;  %v417_v34 = vsub.f32 %v8449_v54, %v9938_v30  ;;  %v9941_v51 = vand.u32 4294901760, %v8463_v62  ;;  %v9944_v44 = vand.u32 4294901760, %v8469_v3  ;;  %v9943_v45 = vand.u32 4294901760, %v8471_v5 }
  0x23   :  { %7461 = vmatprep.subr.bf16.mxu0 %v8555_v9  ;;  %v8639_v37 = vpack.c.bf16 %v404_v31, %v397_v24  ;;  %v285_v16 = vand.u32 4294901760, %v284_v7  ;;  %v292_v50 = vand.u32 4294901760, %v291_v49  ;;  %v411_v61 = vand.u32 4294901760, %v410_v10 }
  0x24   :  { %7623 = vmatpush3.bf16.msra.mxu1 %v8561_v17  ;;  %v418_v2 = vand.u32 4294901760, %v417_v34  ;;  %v298_v30 = vsub.f32 %v8463_v62, %v9941_v51  ;;  %v305_v1 = vsub.f32 %v8469_v3, %v9944_v44  ;;  %v424_v9 = vsub.f32 %v8471_v5, %v9943_v45 }
  0x25   :  { %v8651_v31 = vpack.c.bf16 %v292_v50, %v285_v16  ;;  %v9945_v7 = vand.u32 4294901760, %v8488_v13  ;;  %v9946_v49 = vand.u32 4294901760, %v8490_v14  ;;  %v9947_v24 = vand.u32 4294901760, %v8492_v15 }
  0x26   :  { %7463 = vmatpush3.bf16.msra.mxu0 %v8561_v17  ;;  %v8657_v10 = vpack.c.bf16 %v418_v2, %v411_v61  ;;  %v299_v34 = vand.u32 4294901760, %v298_v30  ;;  %v306_v51 = vand.u32 4294901760, %v305_v1  ;;  %v425_v60 = vand.u32 4294901760, %v424_v9 }
  0x27   :  { %7465 = vmatprep.subr.bf16.mxu0 %v7464_v33  ;;  %v431_v45 = vsub.f32 %v8488_v13, %v9945_v7  ;;  %v312_v50 = vsub.f32 %v8490_v14, %v9946_v49  ;;  %v319_v16 = vsub.f32 %v8492_v15, %v9947_v24  ;;  %v9949_v44 = vand.u32 4294901760, %v8503_v8 }
  0x28   :  { %v8669_v61 = vpack.c.bf16 %v306_v51, %v299_v34  ;;  %v9952_v1 = vand.u32 4294901760, %v8505_v18  ;;  %v9953_v9 = vand.u32 4294901760, %v8519_v35  ;;  %v9954_v33 = vand.u32 4294901760, %v8522_v38 }
  0x29   :  { %v432_v2 = vand.u32 4294901760, %v431_v45  ;;  %v313_v30 = vand.u32 4294901760, %v312_v50  ;;  %v320_v7 = vand.u32 4294901760, %v319_v16  ;;  %v438_v49 = vsub.f32 %v8503_v8, %v9949_v44 }
  0x2a   :  { %v445_v24 = vsub.f32 %v8505_v18, %v9952_v1  ;;  %v326_v51 = vsub.f32 %v8519_v35, %v9953_v9  ;;  %v333_v34 = vsub.f32 %v8522_v38, %v9954_v33  ;;  %v9957_v45 = vand.u32 4294901760, %v8524_v39 }
  0x2b   :  { %v8687_v50 = vpack.c.bf16 %v432_v2, %v425_v60  ;;  %v8689_v16 = vpack.c.bf16 %v320_v7, %v313_v30  ;;  %v439_v17 = vand.u32 4294901760, %v438_v49  ;;  %v9956_v44 = vand.u32 4294901760, %v8535_v55 }
  0x2c   :  { %v446_v25 = vand.u32 4294901760, %v445_v24  ;;  %v327_v4 = vand.u32 4294901760, %v326_v51  ;;  %v334_v1 = vand.u32 4294901760, %v333_v34  ;;  %v452_v9 = vsub.f32 %v8524_v39, %v9957_v45 }
  0x2d   :  { %v459_v33 = vsub.f32 %v8535_v55, %v9956_v44  ;;  %v9958_v59 = vand.u32 4294901760, %v8537_v56  ;;  %v9959_v60 = vand.u32 4294901760, %v8539_v57  ;;  %v9961_v7 = vand.u32 4294901760, %v8546_v63 }
  0x2e   :  { %v8701_v49 = vpack.c.bf16 %v446_v25, %v439_v17  ;;  %v8703_v2 = vpack.c.bf16 %v334_v1, %v327_v4  ;;  %v453_v24 = vand.u32 4294901760, %v452_v9  ;;  %v9962_v30 = vand.u32 4294901760, %v8548_v0 }
  0x2f   :  { %v460_v51 = vand.u32 4294901760, %v459_v33  ;;  %v340_v34 = vsub.f32 %v8537_v56, %v9958_v59  ;;  %v347_v44 = vsub.f32 %v8539_v57, %v9959_v60  ;;  %v466_v45 = vsub.f32 %v8546_v63, %v9961_v7 }
  0x30   :  { %v473_v4 = vsub.f32 %v8548_v0, %v9962_v30  ;;  %v9966_v25 = vand.u32 4294901760, %v8563_v22  ;;  %v9965_v17 = vand.u32 4294901760, %v8565_v23  ;;  %vm1043_vm4 = vcmask 261120  }
  0x31   :  { %v8722_v9 = vpack.c.bf16 %v460_v51, %v453_v24  ;;  %v341_v33 = vand.u32 4294901760, %v340_v34  ;;  %v348_v59 = vand.u32 4294901760, %v347_v44  ;;  %v467_v60 = vand.u32 4294901760, %v466_v45 }
  0x32   :  { %v474_v58 = vand.u32 4294901760, %v473_v4  ;;  %v354_v7 = vsub.f32 %v8563_v22, %v9966_v25  ;;  %v361_v30 = vsub.f32 %v8565_v23, %v9965_v17  ;;  %vm3221_vm11 = vcmask 130048  }
  0x33   :  { %v8732_v40 = vpack.c.bf16 %v348_v59, %v341_v33  ;;  %v9967_v33 = vlaneseq }
  0x34   :  { %v8740_v51 = vpack.c.bf16 %v474_v58, %v467_v60  ;;  %v355_v34 = vand.u32 4294901760, %v354_v7  ;;  %v362_v4 = vand.u32 4294901760, %v361_v30 }
  0x35   :  { %v8767_v58 = vand.u32 127, %v9967_v33 }
  0x36   :  { %v8744_v25 = vpack.c.bf16 %v362_v4, %v355_v34  ;;  %v9968_v34 = vmov 0.0   ;;  %v9975_v4 = vmov 1.0  }
  0x37   :  { %v8770_v60 = vadd.s32 128, %v8767_v58 }
  0x81   :  { %v8772_v7 = vpop.permute.xlu0 %108 }
  0x82   :  { %vm113_vm0 = vcmp.eq.s32.totalorder %v8767_v58, %v8772_v7  ;;  %vm114_vm1 = vcmp.eq.s32.totalorder %v8770_v60, %v8772_v7 }
  0x83   :  { %v6220_v44 = vsel %vm113_vm0, 1.0, %v9968_v34  ;;  %6232 = vmatprep.mubr.msk.f32.mxu1 %vm114_vm1, %v9975_v4  ;;  %v6221_v33 = vsel %vm114_vm1, 1.0, %v9968_v34 }
  0x84   :  { %v8790_v30 = vsub.f32 %v6220_v44, %v6220_v44  ;;  %6233 = vmatmul.mubr.msk.f32.vlgmr.msra.gmra.mrb[0].mxu1 %vm113_vm0, %v9975_v4  ;;  %v8796_v59 = vsub.f32 %v6221_v33, %v6221_v33 }
  0x85   :  { %v8798_v17 = vpop.permute.xlu0 %111 }
  0x86   :  { %vm115_vm2 = vcmp.eq.s32.totalorder %v8767_v58, %v8798_v17  ;;  %vm116_vm3 = vcmp.eq.s32.totalorder %v8770_v60, %v8798_v17  ;;  %v9977_v45 = vand.u32 4294901760, %v8796_v59  ;;  %v82_v60 = vld [vmem:[%s9919_s2 + $0x200] sm:$0xff] }
  0x87   :  { %v6222_v24 = vsel %vm115_vm2, 1.0, %v9968_v34  ;;  %v6223_v33 = vsel %vm116_vm3, 1.0, %v9968_v34  ;;  %6234 = vmatprep.mubr.msk.f32.mxu1 %vm116_vm3, %v9975_v4  ;;  %v10011_v34 = vand.u32 4294901760, %v8790_v30 }
  0x88   :  { %v8818_v42 = vsub.f32 %v6223_v33, %v6223_v33  ;;  %v8820_v1 = vsub.f32 %v6222_v24, %v6222_v24  ;;  %6235 = vmatmul.mubr.msk.f32.gmra.mrb[2].mxu1 %vm115_vm2, %v9975_v4  ;;  %v224_v44 = vsub.f32 %v8796_v59, %v9977_v45 }
  0x89   :  { %v230_v27 = vsub.f32 %v8790_v30, %v10011_v34 }
  0x8a   :  { %v225_v20 = vand.u32 4294901760, %v224_v44  ;;  %v238_v33 = vand.u32 4294901760, %v8818_v42  ;;  %v244_v24 = vand.u32 4294901760, %v8820_v1  ;;  %v10033_v44 = vld [vmem:[#allocation8_spill] sm:$0xff] }
  0x8b   :  { %v231_v19 = vand.u32 4294901760, %v230_v27  ;;  %v10014_v27 = vpack.c.bf16 %v8394_v26, %v8383_v21 }
  0x8c   :  { %226 = vmatprep.mubr.f32.mxu0 %v225_v20  ;;  %v239_v22 = vsub.f32 %v8818_v42, %v238_v33  ;;  %v245_v4 = vsub.f32 %v8820_v1, %v244_v24  ;;  %v10012_v20 = vmov 1.0  }
  0x8d   :  { %232 = vmatmul.mubr.f32.vlgmr.msra.gmra.mrb[0].mxu0 %v231_v19  ;;  %v10013_v19 = vpack.c.bf16 %v8485_v12, %v8444_v52 }
  0x8e   :  { %7467 = vmatpush3.bf16.msra.mxu0 %v8601_v36  ;;  %v240_v45 = vand.u32 4294901760, %v239_v22  ;;  %v246_v34 = vand.u32 4294901760, %v245_v4  ;;  %v10016_v22 = vpack.c.bf16 %v8416_v41, %v8406_v32  ;;  %v10017_v36 = vpack.c.bf16 %v8428_v46, %v8420_v43  ;;  %v10032_v4 = vld [vmem:[#allocation7_spill] sm:$0xff] }
  0x8f   :  { %7469 = vmatprep.subr.bf16.mxu0 %v8616_v11  ;;  %v10018_v11 = vpack.c.bf16 %v8433_v48, %v8431_v47 }
  0x90   :  { %241 = vmatprep.mubr.f32.mxu0 %v240_v45  ;;  %v10030_v45 = vld [vmem:[#allocation5_spill] sm:$0xff] }
  0x91   :  { %247 = vmatmul.mubr.f32.gmra.mrb[2].mxu0 %v246_v34  ;;  %v10034_v34 = vand.u32 4294901760, %v8796_v59 }
  0x92   :  { %7471 = vmatpush3.bf16.msra.mxu0 %v8618_v6  ;;  %6224 = vmatprep.mubr.msk.f32.mxu0 %vm114_vm1, %v10012_v20  ;;  %v10019_v6 = vpack.c.bf16 %v8449_v54, %v8447_v53 }
  0x93   :  { %7473 = vmatprep.subr.bf16.mxu0 %v8639_v37  ;;  %v10020_v37 = vpack.c.bf16 %v8469_v3, %v8463_v62 }
  0x96   :  { %7475 = vmatpush3.bf16.msra.mxu0 %v8651_v31  ;;  %v10021_v31 = vpack.c.bf16 %v8488_v13, %v8471_v5 }
  0x97   :  { %7477 = vmatprep.subr.bf16.mxu0 %v8657_v10  ;;  %v10022_v10 = vpack.c.bf16 %v8492_v15, %v8490_v14 }
  0x9a   :  { %7479 = vmatpush3.bf16.msra.mxu0 %v8669_v61  ;;  %v10023_v61 = vpack.c.bf16 %v8505_v18, %v8503_v8 }
  0x9b   :  { %7481 = vmatprep.subr.bf16.mxu0 %v8687_v50  ;;  %v10024_v50 = vpack.c.bf16 %v8522_v38, %v8519_v35 }
  0x9e   :  { %7483 = vmatpush3.bf16.msra.mxu0 %v8689_v16  ;;  %v10025_v16 = vpack.c.bf16 %v8535_v55, %v8524_v39 }
  0x9f   :  { %7485 = vmatprep.subr.bf16.mxu0 %v8701_v49  ;;  %v10026_v49 = vpack.c.bf16 %v8539_v57, %v8537_v56 }
  0xa2   :  { %7487 = vmatpush3.bf16.msra.mxu0 %v8703_v2  ;;  %v10027_v2 = vpack.c.bf16 %v8548_v0, %v8546_v63 }
  0xa3   :  { %7489 = vmatprep.subr.bf16.mxu0 %v8722_v9 }
  0xa6   :  { %7491 = vmatpush3.bf16.msra.mxu0 %v8732_v40  ;;  %v10015_v40 = vpack.c.bf16 %v8400_v29, %v8398_v28 }
  0xa7   :  { %7493 = vmatprep.subr.bf16.mxu0 %v8740_v51  ;;  %v10031_v51 = vld [vmem:[#allocation6_spill] sm:$0xff] }
  0xaa   :  { %7495 = vmatpush3.bf16.msra.mxu0 %v8744_v25  ;;  %v10028_v25 = vld [vmem:[#allocation21_spill] sm:$0xff] }
  0xab   :  { %7497 = vmatprep.subr.bf16.mxu0 %v10013_v19  ;;  %v10029_v9 = vpack.c.bf16 %v8565_v23, %v10028_v25  ;;  %v10035_v19 = vld [vmem:[#allocation9_spill] sm:$0xff] }
  0xad   :  { %6225 = vmatmul.mubr.msk.f32.vlgmr.msra.gmra.mrb[4].mxu0 %vm113_vm0, %v10012_v20 }
  0xae   :  { %6226 = vmatprep.mubr.msk.f32.mxu0 %vm116_vm3, %v10012_v20  ;;  %7499 = vmatpush3.bf16.msra.mxu0 %v10014_v27  ;;  %v10036_v27 = vld [vmem:[#allocation10_spill] sm:$0xff] }
  0xaf   :  { %7501 = vmatprep.subr.bf16.mxu0 %v10015_v40  ;;  %v10037_v40 = vld [vmem:[#allocation11_spill] sm:$0xff] }
  0xb1   :  { %6227 = vmatmul.mubr.msk.f32.gmra.mrb[6].mxu0 %vm115_vm2, %v10012_v20 }
  0xb2   :  { %7503 = vmatpush3.bf16.msra.mxu0 %v10016_v22  ;;  %621 = vmatprep.mubr.f32.mxu0 %v8796_v59  ;;  %v10038_v22 = vld [vmem:[#allocation12_spill] sm:$0xff]  ;;  %v10044_v59 = vld [vmem:[#allocation18_spill] sm:$0xff] }
  0xb3   :  { %7505 = vmatprep.subr.bf16.mxu0 %v10017_v36  ;;  %v10039_v36 = vld [vmem:[#allocation13_spill] sm:$0xff] }
  0xb6   :  { %7507 = vmatpush3.bf16.msra.mxu0 %v10018_v11  ;;  %v10040_v11 = vld [vmem:[#allocation14_spill] sm:$0xff] }
  0xb7   :  { %7509 = vmatprep.subr.bf16.mxu0 %v10019_v6  ;;  %v10041_v6 = vld [vmem:[#allocation15_spill] sm:$0xff] }
  0xba   :  { %7511 = vmatpush3.bf16.msra.mxu0 %v10020_v37  ;;  %v10042_v37 = vld [vmem:[#allocation16_spill] sm:$0xff] }
  0xbb   :  { %7513 = vmatprep.subr.bf16.mxu0 %v10021_v31  ;;  %v10043_v31 = vld [vmem:[#allocation17_spill] sm:$0xff] }
  0xbe   :  { %7515 = vmatpush3.bf16.msra.mxu0 %v10022_v10  ;;  %v10045_v10 = vld [vmem:[#allocation19_spill] sm:$0xff] }
  0xbf   :  { %7517 = vmatprep.subr.bf16.mxu0 %v10023_v61  ;;  %v10046_v61 = vand.u32 4294901760, %v8444_v52  ;;  %v10054_v52 = vand.u32 4294901760, %v8406_v32  ;;  %v10059_v32 = vand.u32 4294901760, %v8433_v48  ;;  %v10066_v48 = vand.u32 4294901760, %v8490_v14 }
  0xc0   :  { %v10073_v14 = vand.u32 4294901760, %v8535_v55 }
  0xc2   :  { %7519 = vmatpush3.bf16.msra.mxu0 %v10024_v50  ;;  %v10047_v50 = vand.u32 4294901760, %v8485_v12 }
  0xc3   :  { %7521 = vmatprep.subr.bf16.mxu0 %v10025_v16 }
  0xc4   :  { %v7560_v16 = vpack.c.bf16 %v10047_v50, %v10046_v61 }
  0xc6   :  { %7523 = vmatpush3.bf16.msra.mxu0 %v10026_v49  ;;  %v10048_v49 = vld [vmem:[#allocation20_spill] sm:$0xff] }
  0xc7   :  { %7525 = vmatprep.subr.bf16.mxu0 %v10027_v2  ;;  %v10049_v2 = vand.u32 4294901760, %v8383_v21  ;;  %v10055_v21 = vand.u32 4294901760, %v8416_v41 }
  0xc9   :  { %v7566_v12 = vpack.c.bf16 %v10055_v21, %v10054_v52 }
  0xca   :  { %7527 = vmatpush3.bf16.msra.mxu0 %v10029_v9  ;;  %v10050_v9 = vand.u32 4294901760, %v8394_v26  ;;  %v10056_v26 = vand.u32 4294901760, %v8420_v43  ;;  %v10061_v43 = vand.u32 4294901760, %v8449_v54  ;;  %v10068_v54 = vand.u32 4294901760, %v8503_v8 }
  0xcb   :  { %7529 = vmatprep.subr.bf16.mxu0 %v10030_v45  ;;  %v10075_v8 = vand.u32 4294901760, %v8539_v57 }
  0xcc   :  { %v7562_v45 = vpack.c.bf16 %v10050_v9, %v10049_v2  ;;  %v83_v2 = vld [vmem:[%s9919_s2 + $0x208] sm:$0xff] }
  0xcd   :  { %624 = vmatmul.mubr.f32.vlgmr.msra.gmra.mrb[8].mxu0 %v8790_v30 }
  0xce   :  { %630 = vmatprep.mubr.f32.mxu0 %v8818_v42  ;;  %7531 = vmatpush3.bf16.msra.mxu0 %v10031_v51  ;;  %v10051_v51 = vand.u32 4294901760, %v8398_v28  ;;  %v10057_v28 = vand.u32 4294901760, %v8428_v46  ;;  %v10060_v42 = vand.u32 4294901760, %v8447_v53  ;;  %v10067_v53 = vand.u32 4294901760, %v8492_v15 }
  0xcf   :  { %7533 = vmatprep.subr.bf16.mxu0 %v10032_v4  ;;  %v10052_v4 = vand.u32 4294901760, %v8400_v29  ;;  %v10058_v29 = vand.u32 4294901760, %v8431_v47  ;;  %v10065_v47 = vand.u32 4294901760, %v8488_v13  ;;  %v10072_v13 = vand.u32 4294901760, %v8524_v39 }
  0xd0   :  { %v7572_v46 = vpack.c.bf16 %v10061_v43, %v10060_v42  ;;  %v10074_v15 = vand.u32 4294901760, %v8537_v56  ;;  %v10079_v39 = vand.u32 4294901760, %v8565_v23 }
  0xd1   :  { %633 = vmatmul.mubr.f32.gmra.mrb[10].mxu0 %v8820_v1  ;;  %v7570_v41 = vpack.c.bf16 %v10059_v32, %v10058_v29  ;;  %v10062_v1 = vand.u32 4294901760, %v8463_v62  ;;  %v10069_v62 = vand.u32 4294901760, %v8505_v18  ;;  %v10076_v18 = vand.u32 4294901760, %v8546_v63 }
  0xd2   :  { %7535 = vmatpush3.bf16.msra.mxu0 %v10033_v44  ;;  %737 = vmatprep.mubr.f32.mxu0 %v10034_v34  ;;  %v7564_v44 = vpack.c.bf16 %v10052_v4, %v10051_v51  ;;  %v10053_v34 = vand.u32 4294901760, %v8790_v30  ;;  %v10063_v30 = vand.u32 4294901760, %v8469_v3  ;;  %v10070_v3 = vand.u32 4294901760, %v8519_v35 }
  0xd3   :  { %7537 = vmatprep.subr.bf16.mxu0 %v10035_v19  ;;  %v7568_v19 = vpack.c.bf16 %v10057_v28, %v10056_v26  ;;  %v10077_v35 = vand.u32 4294901760, %v8548_v0 }
  0xd6   :  { %7539 = vmatpush3.bf16.msra.mxu0 %v10036_v27 }
  0xd7   :  { %7541 = vmatprep.subr.bf16.mxu0 %v10037_v40  ;;  %v7578_v40 = vpack.c.bf16 %v10067_v53, %v10066_v48 }
  0xda   :  { %7543 = vmatpush3.bf16.msra.mxu0 %v10038_v22  ;;  %v7580_v22 = vpack.c.bf16 %v10069_v62, %v10068_v54 }
  0xdb   :  { %7545 = vmatprep.subr.bf16.mxu0 %v10039_v36 }
  0xde   :  { %7547 = vmatpush3.bf16.msra.mxu0 %v10040_v11  ;;  %v7584_v11 = vpack.c.bf16 %v10073_v14, %v10072_v13 }
  0xdf   :  { %7549 = vmatprep.subr.bf16.mxu0 %v10041_v6  ;;  %v7586_v6 = vpack.c.bf16 %v10075_v8, %v10074_v15 }
  0xe2   :  { %7551 = vmatpush3.bf16.msra.mxu0 %v10042_v37  ;;  %v7588_v37 = vpack.c.bf16 %v10077_v35, %v10076_v18 }
  0xe3   :  { %7553 = vmatprep.subr.bf16.mxu0 %v10043_v31 }
  0xe6   :  { %7555 = vmatpush3.bf16.msra.mxu0 %v10044_v59 }
  0xe7   :  { %7557 = vmatprep.subr.bf16.mxu0 %v10045_v10 }
  0xea   :  { %7559 = vmatpush3.bf16.msra.mxu0 %v10048_v49 }
  0xeb   :  { %7561 = vmatprep.subr.bf16.mxu0 %v7560_v16 }
  0xed   :  { %741 = vmatmul.mubr.f32.vlgmr.msra.gmra.mrb[12].mxu0 %v10053_v34 }
  0xee   :  { %748 = vmatprep.mubr.f32.mxu0 %v238_v33  ;;  %7563 = vmatpush3.bf16.msra.mxu0 %v7562_v45  ;;  %v7574_v33 = vpack.c.bf16 %v10063_v30, %v10062_v1 }
  0xef   :  { %7565 = vmatprep.subr.bf16.mxu0 %v7564_v44 }
  0xf1   :  { %752 = vmatmul.mubr.f32.gmra.mrb[14].mxu0 %v244_v24  ;;  %v10064_v24 = vand.u32 4294901760, %v8471_v5  ;;  %v10071_v5 = vand.u32 4294901760, %v8522_v38  ;;  %v10078_v38 = vand.u32 4294901760, %v10028_v25 }
  0xf2   :  { %7567 = vmatpush3.bf16.msra.mxu0 %v7566_v12  ;;  %6228 = vmatprep.mubr.msk.f32.mxu0 %vm114_vm1, %v10012_v20 }
  0xf3   :  { %7569 = vmatprep.subr.bf16.mxu0 %v7568_v19  ;;  %v7576_v27 = vpack.c.bf16 %v10065_v47, %v10064_v24  ;;  %v7582_v36 = vpack.c.bf16 %v10071_v5, %v10070_v3  ;;  %v7590_v31 = vpack.c.bf16 %v10079_v39, %v10078_v38 }
  0xf6   :  { %7571 = vmatpush3.bf16.msra.mxu0 %v7570_v41 }
  0xf7   :  { %7573 = vmatprep.subr.bf16.mxu0 %v7572_v46 }
  0xfa   :  { %7575 = vmatpush3.bf16.msra.mxu0 %v7574_v33 }
  0xfb   :  { %7577 = vmatprep.subr.bf16.mxu0 %v7576_v27 }
  0xfe   :  { %7579 = vmatpush3.bf16.msra.mxu0 %v7578_v40 }
  0xff   :  { %7581 = vmatprep.subr.bf16.mxu0 %v7580_v22 }
 0x102   :  { %7583 = vmatpush3.bf16.msra.mxu0 %v7582_v36 }
 0x103   :  { %7585 = vmatprep.subr.bf16.mxu0 %v7584_v11 }
 0x106   :  { %7587 = vmatpush3.bf16.msra.mxu0 %v7586_v6 }
 0x107   :  { %7589 = vmatprep.subr.bf16.mxu0 %v7588_v37 }
 0x10a   :  { %7591 = vmatpush3.bf16.msra.mxu0 %v7590_v31  ;;  %v50_v31 = vld [vmem:[%s9919_s2 + $0x100] sm:$0xff] }
 0x10d   :  { %6229 = vmatmul.mubr.msk.f32.vlgmr.msra.gmra.mrb[16].mxu0 %vm113_vm0, %v10012_v20 }
 0x10e   :  { %6230 = vmatprep.mubr.msk.f32.mxu0 %vm116_vm3, %v10012_v20 }
 0x111   :  { %6231 = vmatmul.mubr.msk.f32.gmra.mrb[18].mxu0 %vm115_vm2, %v10012_v20 }
 0x157   :  { %v6466_v55 = vpop.f32.mrb[0].mxu1 }
 0x158   :  { %v6467_v56 = vpop.f32.mrb[1].mxu1 }
 0x159   :  { %v6468_v57 = vadd.f32 %v6467_v56, %v6466_v55  ;;  %v51_v55 = vld [vmem:[%s9919_s2 + $0x108] sm:$0xff]  ;;  %v1090_v56 = vand.u32 4294901760, %v50_v31 }
 0x15b   :  { %v6469_v63 = vpop.f32.mrb[2].mxu1 }
 0x15c   :  { %v6470_v0 = vpop.f32.mrb[3].mxu1 }
 0x15d   :  { %v6471_v23 = vadd.f32 %v6470_v0, %v6469_v63  ;;  %v1180_v63 = vsub.f32 %v50_v31, %v1090_v56 }
 0x160   :  { %v6276_v25 = vpop.f32.mrb[0].mxu0 }
 0x161   :  { %v6277_v59 = vpop.f32.mrb[1].mxu0 }
 0x162   :  { %v6278_v7 = vadd.f32 %v6277_v59, %v6276_v25  ;;  %v53_v25 = vld [vmem:[%s9919_s2 + $0x118] sm:$0xff]  ;;  %v1181_v59 = vand.u32 4294901760, %v1180_v63 }
 0x164   :  { %v6279_v10 = vpop.f32.mrb[2].mxu0  ;;  %v234_v17 = vadd.f32 %v6278_v7, %v82_v60 }
 0x165   :  { %v6280_v61 = vpop.f32.mrb[3].mxu0 }
 0x166   :  { %v6281_v50 = vadd.f32 %v6280_v61, %v6279_v10  ;;  %v1099_v61 = vand.u32 4294901760, %v53_v25 }
 0x168   :  { %v249_v4 = vadd.f32 %v6281_v50, %v83_v2  ;;  %v1182_v50 = vsub.f32 %v1180_v63, %v1181_v59 }
 0x180   :  { %v6314_v16 = vpop.f32.mrb[4].mxu0 }
 0x181   :  { %v6315_v49 = vpop.f32.mrb[5].mxu0 }
 0x182   :  { %v6316_v20 = vadd.f32 %v6315_v49, %v6314_v16  ;;  %v1201_v49 = vsub.f32 %v53_v25, %v1099_v61 }
 0x184   :  { %v481_v9 = vadd.f32 %v6316_v20, %v234_v17  ;;  %v6317_v45 = vpop.f32.mrb[6].mxu0  ;;  %v1183_v17 = vand.u32 4294901760, %v1182_v50 }
 0x185   :  { %v6318_v51 = vpop.f32.mrb[7].mxu0 }
 0x186   :  { %v6319_v44 = vadd.f32 %v6318_v51, %v6317_v45 }
 0x188   :  { %v488_v34 = vadd.f32 %v6319_v44, %v249_v4 }
 0x1a0   :  { %v6352_v52 = vpop.f32.mrb[8].mxu0 }
 0x1a1   :  { %v6353_v21 = vpop.f32.mrb[9].mxu0 }
 0x1a2   :  { %v6354_v12 = vadd.f32 %v6353_v21, %v6352_v52 }
 0x1a4   :  { %v626_v26 = vadd.f32 %v6354_v12, %v481_v9  ;;  %v6355_v28 = vpop.f32.mrb[10].mxu0  ;;  %v1202_v9 = vand.u32 4294901760, %v1201_v49 }
 0x1a5   :  { %v6356_v19 = vpop.f32.mrb[11].mxu0 }
 0x1a6   :  { %v6357_v29 = vadd.f32 %v6356_v19, %v6355_v28  ;;  %v1203_v4 = vsub.f32 %v1201_v49, %v1202_v9  ;;  %v54_v19 = vld [vmem:[%s9919_s2 + $0x120] sm:$0xff] }
 0x1a8   :  { %v635_v32 = vadd.f32 %v6357_v29, %v488_v34  ;;  %v1204_v34 = vand.u32 4294901760, %v1203_v4  ;;  %v55_v29 = vld [vmem:[%s9919_s2 + $0x128] sm:$0xff] }
 0x1c0   :  { %v6390_v41 = vpop.f32.mrb[12].mxu0 }
 0x1c1   :  { %v6391_v42 = vpop.f32.mrb[13].mxu0 }
 0x1c2   :  { %v6392_v43 = vadd.f32 %v6391_v42, %v6390_v41  ;;  %v1621_v41 = vand.u32 4294901760, %v55_v29 }
 0x1c4   :  { %v743_v46 = vadd.f32 %v6392_v43, %v626_v26  ;;  %v6393_v1 = vpop.f32.mrb[14].mxu0 }
 0x1c5   :  { %v6394_v30 = vpop.f32.mrb[15].mxu0 }
 0x1c6   :  { %v6395_v33 = vadd.f32 %v6394_v30, %v6393_v1 }
 0x1c8   :  { %v754_v24 = vadd.f32 %v6395_v33, %v635_v32  ;;  %v1618_v32 = vand.u32 4294901760, %v54_v19 }
 0x1ca   :  { %v9081_v42 = vpack.c.bf16 %v1621_v41, %v1618_v32  ;;  %v1708_v43 = vsub.f32 %v54_v19, %v1618_v32  ;;  %v58_v19 = vld [vmem:[%s9919_s2 + $0x140] sm:$0xff] }
 0x1cc   :  { %v1709_v1 = vand.u32 4294901760, %v1708_v43 }
 0x1ce   :  { %v1710_v33 = vsub.f32 %v1708_v43, %v1709_v1 }
 0x1e0   :  { %v6428_v47 = vpop.f32.mrb[16].mxu0 }
 0x1e1   :  { %v6429_v27 = vpop.f32.mrb[17].mxu0 }
 0x1e2   :  { %v6430_v48 = vadd.f32 %v6429_v27, %v6428_v47  ;;  %v1711_v47 = vand.u32 4294901760, %v1710_v33 }
 0x1e4   :  { %v922_v53 = vadd.f32 %v6430_v48, %v743_v46  ;;  %v6431_v40 = vpop.f32.mrb[18].mxu0  ;;  %v1715_v46 = vsub.f32 %v55_v29, %v1621_v41  ;;  %v59_v29 = vld [vmem:[%s9919_s2 + $0x148] sm:$0xff]  ;;  %v2146_v41 = vand.u32 4294901760, %v58_v19 }
 0x1e5   :  { %v6432_v54 = vpop.f32.mrb[19].mxu0 }
 0x1e6   :  { %v6433_v62 = vadd.f32 %v6432_v54, %v6431_v40  ;;  %v9033_v22 = vadd.f32 %v6468_v57, %v922_v53  ;;  %v1093_v57 = vand.u32 4294901760, %v51_v55  ;;  %v1716_v30 = vand.u32 4294901760, %v1715_v46 }
 0x1e7   :  { %v9090_v54 = vpack.c.bf16 %v1715_v46, %v1708_v43  ;;  %v2149_v43 = vand.u32 4294901760, %v59_v29 }
 0x1e8   :  { %v929_v3 = vadd.f32 %v6433_v62, %v754_v24  ;;  %v1044_v5 = vsel %vm1043_vm4, %v9033_v22, 0.0  ;;  %v1187_v0 = vsub.f32 %v51_v55, %v1093_v57  ;;  %v9065_v21 = vpack.c.bf16 %v1093_v57, %v1090_v56  ;;  %v56_v57 = vld [vmem:[%s9919_s2 + $0x130] sm:$0xff] }
 0x1e9   :  { %1045 = vadd.xlane.f32.xlu1 %v1044_v5  ;;  %v1717_v24 = vsub.f32 %v1715_v46, %v1716_v30  ;;  %v9092_v62 = vpack.c.bf16 %v1716_v30, %v1709_v1  ;;  %v60_v46 = vld [vmem:[%s9919_s2 + $0x150] sm:$0xff]  ;;  %v61_v1 = vld [vmem:[%s9919_s2 + $0x158] sm:$0xff]  ;;  %v9186_v30 = vsub.f32 %v58_v19, %v2146_v41  ;;  %v9188_v33 = vsub.f32 %v59_v29, %v2149_v43 }
 0x1ea   :  { %v9037_v36 = vadd.f32 %v6471_v23, %v929_v3  ;;  %v52_v23 = vld [vmem:[%s9919_s2 + $0x110] sm:$0xff]  ;;  %v1188_v7 = vand.u32 4294901760, %v1187_v0  ;;  %v7640_v12 = vpack.c.bf16 %v1187_v0, %v1180_v63  ;;  %7625 = vmatprep.subr.bf16.mxu1 %v9065_v21  ;;  %v57_v63 = vld [vmem:[%s9919_s2 + $0x138] sm:$0xff] }
 0x1eb   :  { %v1096_v10 = vand.u32 4294901760, %v52_v23  ;;  %7627 = vmatpush3.bf16.msra.mxu1 %v9065_v21  ;;  %v1718_v27 = vand.u32 4294901760, %v1717_v24  ;;  %v2152_v24 = vand.u32 4294901760, %v60_v46 }
 0x1ec   :  { %v1047_v13 = vsel %vm1043_vm4, %v9037_v36, 0.0  ;;  %v1189_v60 = vsub.f32 %v1187_v0, %v1188_v7  ;;  %v9084_v48 = vpack.c.bf16 %v1188_v7, %v1181_v59  ;;  %v1624_v59 = vand.u32 4294901760, %v56_v57 }
 0x1ed   :  { %1048 = vadd.xlane.f32.xlu1 %v1047_v13  ;;  %v1194_v16 = vsub.f32 %v52_v23, %v1096_v10  ;;  %v9068_v26 = vpack.c.bf16 %v1099_v61, %v1096_v10  ;;  %v9086_v53 = vpack.c.bf16 %v1718_v27, %v1711_v47  ;;  %v1627_v7 = vand.u32 4294901760, %v57_v63 }
 0x1ee   :  { %v1190_v20 = vand.u32 4294901760, %v1189_v60  ;;  %v9121_v60 = vsub.f32 %v56_v57, %v1624_v59  ;;  %v2155_v47 = vand.u32 4294901760, %v61_v1 }
 0x1ef   :  { %v1195_v2 = vand.u32 4294901760, %v1194_v16  ;;  %v9071_v28 = vpack.c.bf16 %v1201_v49, %v1194_v16  ;;  %7629 = vmatprep.subr.bf16.mxu1 %v9068_v26 }
 0x1f0   :  { %v7632_v45 = vpack.c.bf16 %v1190_v20, %v1183_v17  ;;  %7631 = vmatpush3.bf16.msra.mxu1 %v9068_v26 }
 0x1f1   :  { %v1196_v51 = vsub.f32 %v1194_v16, %v1195_v2  ;;  %7673 = vmatprep.subr.bf16.mxu1 %v9081_v42  ;;  %v9088_v40 = vpack.c.bf16 %v1202_v9, %v1195_v2  ;;  %v9123_v16 = vsub.f32 %v57_v63, %v1627_v7  ;;  %v1723_v9 = vand.u32 4294901760, %v9121_v60 }
 0x1f2   :  { %7633 = vmatprep.subr.bf16.mxu0 %v7632_v45 }
 0x1f3   :  { %v1197_v44 = vand.u32 4294901760, %v1196_v51  ;;  %7635 = vmatpush3.bf16.msra.mxu0 %v7632_v45  ;;  %v1730_v45 = vand.u32 4294901760, %v9123_v16  ;;  %v7692_v27 = vpack.c.bf16 %v9123_v16, %v9121_v60 }
 0x1f5   :  { %v7636_v52 = vpack.c.bf16 %v1204_v34, %v1197_v44  ;;  %v9147_v44 = vpack.c.bf16 %v1627_v7, %v1624_v59  ;;  %v1724_v34 = vsub.f32 %v9121_v60, %v1723_v9 }
 0x1f7   :  { %7637 = vmatprep.subr.bf16.mxu0 %v7636_v52 }
 0x1f8   :  { %7639 = vmatpush3.bf16.msra.mxu0 %v7636_v52  ;;  %v1731_v52 = vsub.f32 %v9123_v16, %v1730_v45 }
 0x1f9   :  { %7641 = vmatprep.subr.bf16.mxu0 %v7640_v12 }
 0x276   :  { %v1046_v14 = vpop.xlane.xlu1 %1045 }
 0x277   :  { %v1051_v11 = vmul.f32 0.03125, %v1046_v14 }
 0x279   :  { %v9042_v15 = vsub.f32 %v9033_v22, %v1051_v11 }
 0x27a   :  { %v1049_v8 = vpop.xlane.xlu1 %1048 }
 0x27b   :  { %v1052_v6 = vmul.f32 0.03125, %v1049_v8  ;;  %v1055_v18 = vmul.f32 %v9042_v15, %v9042_v15 }
 0x27d   :  { %v9047_v35 = vsub.f32 %v9037_v36, %v1052_v6  ;;  %v1057_v37 = vsel %vm1043_vm4, %v1055_v18, 0.0  ;;  %v6236_v18 = vld [vmem:[%s9919_s2 + $0x210] ss:$0 sm:$0xff] }
 0x27e   :  { %1058 = vadd.xlane.f32.xlu0 %v1057_v37 }
 0x27f   :  { %v1056_v38 = vmul.f32 %v9047_v35, %v9047_v35 }
 0x281   :  { %v1060_v39 = vsel %vm1043_vm4, %v1056_v38, 0.0  ;;  %v6237_v38 = vld [vmem:[%s9919_s2 + $0x211] ss:$0 sm:$0xff] }
 0x282   :  { %1061 = vadd.xlane.f32.xlu1 %v1060_v39 }
 0x30b   :  { %v1059_v3 = vpop.xlane.xlu0 %1058 }
 0x30c   :  { %v1063_v5 = vmul.f32 0.03125, %v1059_v3  ;;  %v9199_v3 = vsub.f32 %v60_v46, %v2152_v24 }
 0x30e   :  { %v1065_v13 = vadd.f32 1e-05, %v1063_v5  ;;  %v9201_v5 = vsub.f32 %v61_v1, %v2155_v47 }
 0x30f   :  { %v1062_v14 = vpop.xlane.xlu1 %1061 }
 0x310   :  { %8259 = vrsqrt.f32 %v1065_v13  ;;  %v1064_v11 = vmul.f32 0.03125, %v1062_v14 }
 0x312   :  { %v1066_v8 = vadd.f32 1e-05, %v1064_v11  ;;  %v9221_v11 = vpack.c.bf16 %v2155_v47, %v2152_v24 }
 0x314   :  { %8261 = vrsqrt.f32 %v1066_v8 }
 0x31a   :  { %v8260_v6 = vpop.eup %8259 }
 0x31b   :  { %v1069_v37 = vmul.f32 %v8260_v6, %v9042_v15 }
 0x31d   :  { %v1075_v39 = vmul.f32 %v6236_v18, %v1069_v37 }
 0x31e   :  { %v8262_v31 = vpop.eup %8261 }
 0x31f   :  { %v1081_v55 = vadd.f32 %v6237_v38, %v1075_v39  ;;  %v1070_v56 = vmul.f32 %v8262_v31, %v9047_v35  ;;  %v7708_v31 = vpack.c.bf16 %v1730_v45, %v1723_v9 }
 0x321   :  { %v1084_v0 = vsel %vm1043_vm4, %v1081_v55, 0  ;;  %v1076_v15 = vmul.f32 %v6236_v18, %v1070_v56  ;;  %v7736_v56 = vpack.c.bf16 %v9188_v33, %v9186_v30 }
 0x322   :  { %v9109_v23 = vand.u32 4294901760, %v1084_v0 }
 0x323   :  { %v1082_v25 = vadd.f32 %v6237_v38, %v1076_v15 }
 0x324   :  { %6827 = vmatprep.mubr.f32.mxu0 %v9109_v23  ;;  %v9113_v35 = vsub.f32 %v1084_v0, %v9109_v23 }
 0x325   :  { %v1087_v10 = vsel %vm1043_vm4, %v1082_v25, 0 }
 0x326   :  { %v9116_v61 = vand.u32 4294901760, %v1087_v10  ;;  %v9119_v50 = vand.u32 4294901760, %v9113_v35 }
 0x328   :  { %v9126_v49 = vsub.f32 %v1087_v10, %v9116_v61  ;;  %6828 = vmatmul.mubr.f32.vlgmr.msra.gmra.mrb[20].mxu0 %v9116_v61  ;;  %v1161_v17 = vsub.f32 %v9113_v35, %v9119_v50 }
 0x329   :  { %7643 = vmatpush3.bf16.msra.mxu0 %v7640_v12  ;;  %6838 = vmatprep.mubr.f32.mxu0 %v9113_v35  ;;  %v1725_v12 = vand.u32 4294901760, %v1724_v34 }
 0x32a   :  { %7645 = vmatprep.subr.bf16.mxu0 %v9071_v28  ;;  %v9133_v20 = vand.u32 4294901760, %v1161_v17  ;;  %v9136_v2 = vand.u32 4294901760, %v9126_v49 }
 0x32c   :  { %6816 = vmatprep.mubr.f32.mxu1 %v9133_v20  ;;  %v1171_v51 = vsub.f32 %v9126_v49, %v9136_v2 }
 0x32d   :  { %7647 = vmatpush3.bf16.msra.mxu0 %v9071_v28  ;;  %v1732_v28 = vand.u32 4294901760, %v1731_v52 }
 0x32e   :  { %7649 = vmatprep.subr.bf16.mxu0 %v9065_v21  ;;  %v9145_v4 = vand.u32 4294901760, %v1171_v51 }
 0x32f   :  { %v7684_v32 = vpack.c.bf16 %v1732_v28, %v1725_v12 }
 0x330   :  { %6817 = vmatmul.mubr.f32.vlgmr.msra.gmra.mrb[4].mxu1 %v9145_v4  ;;  %6839 = vmatmul.mubr.f32.vlgmr.msra.gmra.mrb[20].mxu0 %v9126_v49 }
 0x331   :  { %7651 = vmatpush3.bf16.msra.mxu0 %v9065_v21  ;;  %7675 = vmatpush3.bf16.msra.mxu1 %v9081_v42 }
 0x332   :  { %6849 = vmatprep.mubr.f32.mxu0 %v9119_v50  ;;  %6882 = vmatprep.mubr.f32.mxu1 %v9133_v20 }
 0x333   :  { %7653 = vmatprep.subr.bf16.mxu0 %v9068_v26  ;;  %7677 = vmatprep.subr.bf16.mxu1 %v9147_v44 }
 0x335   :  { %7655 = vmatpush3.bf16.msra.mxu0 %v9068_v26  ;;  %7679 = vmatpush3.bf16.msra.mxu1 %v9147_v44 }
 0x336   :  { %7657 = vmatprep.subr.bf16.mxu0 %v9084_v48  ;;  %7681 = vmatprep.subr.bf16.mxu1 %v9086_v53 }
 0x338   :  { %6883 = vmatmul.mubr.f32.vlgmr.msra.gmra.mrb[6].mxu1 %v9145_v4  ;;  %6850 = vmatmul.mubr.f32.vlgmr.msra.gmra.mrb[20].mxu0 %v9136_v2 }
 0x339   :  { %7659 = vmatpush3.bf16.msra.mxu0 %v9084_v48  ;;  %7683 = vmatpush3.bf16.msra.mxu1 %v9086_v53  ;;  %v2237_v48 = vand.u32 4294901760, %v9186_v30  ;;  %v2244_v53 = vand.u32 4294901760, %v9188_v33 }
 0x33a   :  { %6893 = vmatprep.mubr.f32.mxu1 %v9109_v23  ;;  %6860 = vmatprep.mubr.f32.mxu0 %v9109_v23 }
 0x33b   :  { %7661 = vmatprep.subr.bf16.mxu0 %v9088_v40  ;;  %7685 = vmatprep.subr.bf16.mxu1 %v7684_v32  ;;  %v2238_v13 = vsub.f32 %v9186_v30, %v2237_v48  ;;  %v2245_v14 = vsub.f32 %v9188_v33, %v2244_v53 }
 0x33d   :  { %7663 = vmatpush3.bf16.msra.mxu0 %v9088_v40  ;;  %7687 = vmatpush3.bf16.msra.mxu1 %v7684_v32  ;;  %v9207_v40 = vpack.c.bf16 %v2149_v43, %v2146_v41  ;;  %v2239_v8 = vand.u32 4294901760, %v2238_v13  ;;  %v2246_v6 = vand.u32 4294901760, %v2245_v14 }
 0x33e   :  { %7665 = vmatprep.subr.bf16.mxu0 %v9065_v21  ;;  %7689 = vmatprep.subr.bf16.mxu1 %v9090_v54 }
 0x340   :  { %6894 = vmatmul.mubr.f32.vlgmr.msra.gmra.mrb[6].mxu1 %v9116_v61  ;;  %6861 = vmatmul.mubr.f32.vlgmr.msra.gmra.mrb[20].mxu0 %v9116_v61 }
 0x341   :  { %7667 = vmatpush3.bf16.msra.mxu0 %v9065_v21  ;;  %7691 = vmatpush3.bf16.msra.mxu1 %v9090_v54  ;;  %v2251_v21 = vand.u32 4294901760, %v9199_v3  ;;  %v2258_v54 = vand.u32 4294901760, %v9201_v5 }
 0x342   :  { %6904 = vmatprep.mubr.f32.mxu1 %v9113_v35  ;;  %6871 = vmatprep.mubr.f32.mxu0 %v9109_v23 }
 0x343   :  { %7669 = vmatprep.subr.bf16.mxu0 %v9068_v26  ;;  %7693 = vmatprep.subr.bf16.mxu1 %v7692_v27  ;;  %v2252_v18 = vsub.f32 %v9199_v3, %v2251_v21  ;;  %v2259_v37 = vsub.f32 %v9201_v5, %v2258_v54  ;;  %v7756_v57 = vpack.c.bf16 %v2258_v54, %v2251_v21 }
 0x345   :  { %7671 = vmatpush3.bf16.msra.mxu0 %v9068_v26  ;;  %7695 = vmatpush3.bf16.msra.mxu1 %v7692_v27  ;;  %v7728_v26 = vpack.c.bf16 %v2246_v6, %v2239_v8  ;;  %v2253_v38 = vand.u32 4294901760, %v2252_v18  ;;  %v2260_v39 = vand.u32 4294901760, %v2259_v37 }
 0x346   :  { %7697 = vmatprep.subr.bf16.mxu1 %v9081_v42  ;;  %7721 = vmatprep.subr.bf16.mxu0 %v9207_v40 }
 0x347   :  { %v7732_v55 = vpack.c.bf16 %v2260_v39, %v2253_v38 }
 0x348   :  { %6905 = vmatmul.mubr.f32.vlgmr.msra.gmra.mrb[6].mxu1 %v9126_v49  ;;  %6872 = vmatmul.mubr.f32.vlgmr.msra.gmra.mrb[20].mxu0 %v9116_v61 }
 0x349   :  { %7699 = vmatpush3.bf16.msra.mxu1 %v9081_v42  ;;  %6915 = vmatprep.mubr.f32.mxu1 %v9119_v50 }
 0x34a   :  { %7723 = vmatpush3.bf16.msra.mxu0 %v9207_v40  ;;  %6948 = vmatprep.mubr.f32.mxu0 %v9133_v20 }
 0x34b   :  { %7701 = vmatprep.subr.bf16.mxu1 %v9147_v44  ;;  %7725 = vmatprep.subr.bf16.mxu0 %v9221_v11 }
 0x34d   :  { %7703 = vmatpush3.bf16.msra.mxu1 %v9147_v44 }
 0x34e   :  { %7727 = vmatpush3.bf16.msra.mxu0 %v9221_v11  ;;  %7705 = vmatprep.subr.bf16.mxu1 %v9092_v62 }
 0x34f   :  { %7729 = vmatprep.subr.bf16.mxu0 %v7728_v26 }
 0x350   :  { %6916 = vmatmul.mubr.f32.vlgmr.msra.gmra.mrb[6].mxu1 %v9136_v2 }
 0x351   :  { %6949 = vmatmul.mubr.f32.vlgmr.msra.gmra.mrb[22].mxu0 %v9145_v4  ;;  %7707 = vmatpush3.bf16.msra.mxu1 %v9092_v62  ;;  %v7740_v62 = vpack.c.bf16 %v9201_v5, %v9199_v3 }
 0x352   :  { %6926 = vmatprep.mubr.f32.mxu1 %v9109_v23  ;;  %7731 = vmatpush3.bf16.msra.mxu0 %v7728_v26  ;;  %v10080_v26 = vlaneseq }
 0x353   :  { %6959 = vmatprep.mubr.f32.mxu0 %v9109_v23  ;;  %7709 = vmatprep.subr.bf16.mxu1 %v7708_v31 }
 0x354   :  { %7733 = vmatprep.subr.bf16.mxu0 %v7732_v55  ;;  %v3190_v38 = vshrl.u32 %v10080_v26, 7 }
 0x355   :  { %7711 = vmatpush3.bf16.msra.mxu1 %v7708_v31 }
 0x356   :  { %7735 = vmatpush3.bf16.msra.mxu0 %v7732_v55  ;;  %7713 = vmatprep.subr.bf16.mxu1 %v9081_v42  ;;  %v3191_v39 = vadd.s32 8, %v3190_v38  ;;  %v3192_v31 = vshra.s32 %v3190_v38, 3  ;;  %v3194_v55 = vshra.s32 %v8767_v58, 3  ;;  %vm3197_vm6 = vcmp.le.s32.totalorder %v8767_v58, %v3190_v38 }
 0x357   :  { %7737 = vmatprep.subr.bf16.mxu0 %v7736_v56 }
 0x358   :  { %6927 = vmatmul.mubr.f32.vlgmr.msra.gmra.mrb[6].mxu1 %v9116_v61  ;;  %vm3195_vm5 = vcmp.eq.s32.totalorder %v3192_v31, %v3194_v55  ;;  %vm3198_vm8 = vcmp.le.s32.totalorder %v8767_v58, %v3191_v39 }
 0x359   :  { %6960 = vmatmul.mubr.f32.vlgmr.msra.gmra.mrb[22].mxu0 %v9116_v61  ;;  %7715 = vmatpush3.bf16.msra.mxu1 %v9081_v42  ;;  %v7752_v42 = vpack.c.bf16 %v2244_v53, %v2237_v48  ;;  %vm3199_vm9 = vmand %vm3195_vm5, %vm3197_vm6 }
 0x35a   :  { %6937 = vmatprep.mubr.f32.mxu1 %v9109_v23  ;;  %7739 = vmatpush3.bf16.msra.mxu0 %v7736_v56  ;;  %v3205_v56 = vld [vmem:[%s9918_s1] sm:$0x1] }
 0x35b   :  { %6970 = vmatprep.mubr.f32.mxu0 %v9113_v35  ;;  %7717 = vmatprep.subr.bf16.mxu1 %v9147_v44 }
 0x35c   :  { %7741 = vmatprep.subr.bf16.mxu0 %v7740_v62 }
 0x35d   :  { %7719 = vmatpush3.bf16.msra.mxu1 %v9147_v44 }
 0x35e   :  { %7743 = vmatpush3.bf16.msra.mxu0 %v7740_v62  ;;  %v3193_v62 = vshra.s32 %v3191_v39, 3 }
 0x35f   :  { %7745 = vmatprep.subr.bf16.mxu0 %v9207_v40 }
 0x360   :  { %6938 = vmatmul.mubr.f32.vlgmr.msra.gmra.mrb[6].mxu1 %v9116_v61  ;;  %vm3196_vm7 = vcmp.eq.s32.totalorder %v3193_v62, %v3194_v55 }
 0x361   :  { %6971 = vmatmul.mubr.f32.vlgmr.msra.gmra.mrb[22].mxu0 %v9126_v49  ;;  %vm3200_vm10 = vmand %vm3196_vm7, %vm3198_vm8 }
 0x362   :  { %7747 = vmatpush3.bf16.msra.mxu0 %v9207_v40  ;;  %6981 = vmatprep.mubr.f32.mxu0 %v9119_v50 }
 0x363   :  { %7749 = vmatprep.subr.bf16.mxu0 %v9221_v11 }
 0x366   :  { %7751 = vmatpush3.bf16.msra.mxu0 %v9221_v11 }
 0x367   :  { %7753 = vmatprep.subr.bf16.mxu0 %v7752_v42 }
 0x369   :  { %6982 = vmatmul.mubr.f32.vlgmr.msra.gmra.mrb[22].mxu0 %v9136_v2 }
 0x36a   :  { %7755 = vmatpush3.bf16.msra.mxu0 %v7752_v42  ;;  %6992 = vmatprep.mubr.f32.mxu0 %v9109_v23  ;;  %v3206_v42 = vcvt.s32.f32 %v3205_v56 }
 0x36b   :  { %7757 = vmatprep.subr.bf16.mxu0 %v7756_v57 }
 0x36e   :  { %7759 = vmatpush3.bf16.msra.mxu0 %v7756_v57  ;;  %v3210_v57 = vsub.s32 0, %v3190_v38  ;;  %v65_v38 = vld [vmem:[%s9919_s2 + $0x178] sm:$0xff] }
 0x36f   :  { %7761 = vmatprep.subr.bf16.mxu0 %v9207_v40  ;;  %v3768_v31 = vand.u32 4294901760, %v65_v38 }
 0x371   :  { %6993 = vmatmul.mubr.f32.vlgmr.msra.gmra.mrb[22].mxu0 %v9116_v61 }
 0x372   :  { %7763 = vmatpush3.bf16.msra.mxu0 %v9207_v40  ;;  %7003 = vmatprep.mubr.f32.mxu0 %v9109_v23 }
 0x373   :  { %7765 = vmatprep.subr.bf16.mxu0 %v9221_v11 }
 0x376   :  { %7767 = vmatpush3.bf16.msra.mxu0 %v9221_v11 }
 0x379   :  { %7004 = vmatmul.mubr.f32.vlgmr.msra.gmra.mrb[22].mxu0 %v9116_v61 }
 0x403   :  { %v6818_v63 = vpop.f32.mrb[4].mxu1 }
 0x404   :  { %v1164_v0 = vpop.f32.mrb[5].mxu1 }
 0x41b   :  { %v6873_v15 = vpop.f32.mrb[20].mxu0 }
 0x41c   :  { %v8152_v25 = vadd.f32 %v6873_v15, %v6818_v63  ;;  %v1607_v59 = vpop.f32.mrb[21].mxu0  ;;  %v3211_v63 = vrot.slane %v3206_v42, %v3210_v57 }
 0x41d   :  { %v8153_v7 = vadd.f32 %v1607_v59, %v1164_v0  ;;  %v10081_v0 = vmov 0.0  }
 0x41e   :  { %v2677_v49 = vsel %vm1043_vm4, %v8152_v25, 0  ;;  %v6238_v15 = vsel %vm3199_vm9, 1.0, %v10081_v0  ;;  %v6239_v25 = vsel %vm3200_vm10, 1.0, %v10081_v0 }
 0x41f   :  { %v2674_v35 = vsel %vm1043_vm4, %v8153_v7, 0  ;;  %v9282_v17 = vand.u32 4294901760, %v2677_v49  ;;  %v3213_v59 = vmul.f32 %v6238_v15, %v3211_v63  ;;  %v3214_v7 = vmul.f32 %v6239_v25, %v3211_v63 }
 0x420   :  { %v9278_v10 = vand.u32 4294901760, %v2674_v35  ;;  %v3870_v15 = vsub.f32 %v65_v38, %v3768_v31 }
 0x421   :  { %v2763_v20 = vsub.f32 %v2677_v49, %v9282_v17 }
 0x422   :  { %v2753_v50 = vsub.f32 %v2674_v35, %v9278_v10  ;;  %v3215_v35 = vsub.f32 1.0, %v3213_v59 }
 0x423   :  { %v2764_v34 = vand.u32 4294901760, %v2763_v20 }
 0x424   :  { %v2754_v60 = vand.u32 4294901760, %v2753_v50 }
 0x425   :  { %v2765_v43 = vsub.f32 %v2763_v20, %v2764_v34 }
 0x426   :  { %v2755_v23 = vsub.f32 %v2753_v50, %v2754_v60 }
 0x427   :  { %v2766_v33 = vand.u32 4294901760, %v2765_v43 }
 0x428   :  { %v2756_v16 = vand.u32 4294901760, %v2755_v23 }
 0x42a   :  { %7010 = vmatprep.mubr.f32.mxu1 %v2756_v16 }
 0x433   :  { %v6939_v61 = vpop.f32.mrb[6].mxu1 }
 0x434   :  { %v2683_v2 = vsel %vm1043_vm4, %v6939_v61, 0  ;;  %v2135_v9 = vpop.f32.mrb[7].mxu1 }
 0x435   :  { %v2689_v45 = vand.u32 4294901760, %v2683_v2  ;;  %v2680_v51 = vsel %vm1043_vm4, %v2135_v9, 0 }
 0x436   :  { %v2686_v4 = vand.u32 4294901760, %v2680_v51 }
 0x437   :  { %v2781_v44 = vsub.f32 %v2683_v2, %v2689_v45 }
 0x438   :  { %v7768_v52 = vpack.c.bf16 %v2689_v45, %v2686_v4  ;;  %v2774_v12 = vsub.f32 %v2680_v51, %v2686_v4 }
 0x439   :  { %v2782_v28 = vand.u32 4294901760, %v2781_v44 }
 0x43a   :  { %v2775_v19 = vand.u32 4294901760, %v2774_v12  ;;  %7769 = vmatprep.subr.bf16.mxu1 %v7768_v52  ;;  %v7776_v29 = vpack.c.bf16 %v2781_v44, %v2774_v12 }
 0x43b   :  { %v2783_v32 = vsub.f32 %v2781_v44, %v2782_v28  ;;  %7771 = vmatpush3.bf16.xpose.msra.mxu1 %v7768_v52 }
 0x43c   :  { %v2776_v41 = vsub.f32 %v2774_v12, %v2775_v19  ;;  %v7784_v46 = vpack.c.bf16 %v2782_v28, %v2775_v19 }
 0x43d   :  { %v2784_v1 = vand.u32 4294901760, %v2783_v32 }
 0x43e   :  { %v2777_v30 = vand.u32 4294901760, %v2776_v41 }
 0x440   :  { %v7772_v24 = vpack.c.bf16 %v2784_v1, %v2777_v30 }
 0x442   :  { %7011 = vmatmul.mubr.f32.vlgmr.msra.gmra.mrb[8].mxu1 %v2766_v33  ;;  %7773 = vmatprep.subr.bf16.mxu1 %v7772_v24 }
 0x443   :  { %7775 = vmatpush3.bf16.xpose.msra.mxu1 %v7772_v24  ;;  %7017 = vmatprep.mubr.f32.mxu1 %v9278_v10 }
 0x444   :  { %7777 = vmatprep.subr.bf16.mxu1 %v7776_v29 }
 0x44a   :  { %7018 = vmatmul.mubr.f32.vlgmr.msra.gmra.mrb[8].mxu1 %v9282_v17 }
 0x44b   :  { %7779 = vmatpush3.bf16.xpose.msra.mxu1 %v7776_v29  ;;  %7024 = vmatprep.mubr.f32.mxu1 %v2753_v50 }
 0x44c   :  { %v7005_v47 = vpop.f32.mrb[22].mxu0  ;;  %7781 = vmatprep.subr.bf16.mxu1 %v7768_v52 }
 0x44d   :  { %v3254_v27 = vand.u32 4294901760, %v7005_v47  ;;  %v2663_v48 = vpop.f32.mrb[23].mxu0 }
 0x44e   :  { %v3251_v53 = vand.u32 4294901760, %v2663_v48 }
 0x44f   :  { %v3346_v3 = vsub.f32 %v7005_v47, %v3254_v27 }
 0x450   :  { %v9289_v5 = vpack.c.bf16 %v3254_v27, %v3251_v53  ;;  %v3339_v40 = vsub.f32 %v2663_v48, %v3251_v53 }
 0x451   :  { %v3347_v13 = vand.u32 4294901760, %v3346_v3 }
 0x452   :  { %v3340_v14 = vand.u32 4294901760, %v3339_v40  ;;  %7793 = vmatprep.subr.bf16.mxu0 %v9289_v5  ;;  %7025 = vmatmul.mubr.f32.vlgmr.msra.gmra.mrb[8].mxu1 %v2763_v20  ;;  %v9292_v21 = vpack.c.bf16 %v3346_v3, %v3339_v40 }
 0x453   :  { %v3348_v54 = vsub.f32 %v3346_v3, %v3347_v13  ;;  %7795 = vmatpush3.bf16.msra.mxu0 %v9289_v5  ;;  %7783 = vmatpush3.bf16.xpose.msra.mxu1 %v7768_v52 }
 0x454   :  { %v3341_v11 = vsub.f32 %v3339_v40, %v3340_v14  ;;  %7031 = vmatprep.mubr.f32.mxu1 %v2754_v60  ;;  %7785 = vmatprep.subr.bf16.mxu1 %v7784_v46  ;;  %v9295_v8 = vpack.c.bf16 %v3347_v13, %v3340_v14  ;;  %v3217_v60 = vmul.f32 -1e+09, %v3215_v35  ;;  %v3871_v35 = vand.u32 4294901760, %v3870_v15 }
 0x455   :  { %v3349_v6 = vand.u32 4294901760, %v3348_v54 }
 0x456   :  { %v3342_v18 = vand.u32 4294901760, %v3341_v11  ;;  %v63_v11 = vld [vmem:[%s9919_s2 + $0x168] sm:$0xff] }
 0x458   :  { %v9297_v37 = vpack.c.bf16 %v3349_v6, %v3342_v18  ;;  %v3762_v18 = vand.u32 4294901760, %v63_v11 }
 0x45a   :  { %7797 = vmatprep.subr.bf16.mxu0 %v9297_v37  ;;  %7032 = vmatmul.mubr.f32.vlgmr.msra.gmra.mrb[8].mxu1 %v2764_v34  ;;  %v3856_v26 = vsub.f32 %v63_v11, %v3762_v18  ;;  %v92_v11 = vld [vmem:[%s9920_s3 + $0x30] sm:$0xff] }
 0x45b   :  { %7787 = vmatpush3.bf16.xpose.msra.mxu1 %v7784_v46  ;;  %7038 = vmatprep.mubr.f32.mxu1 %v9278_v10 }
 0x45c   :  { %7789 = vmatprep.subr.bf16.mxu1 %v7768_v52  ;;  %v3857_v56 = vand.u32 4294901760, %v3856_v26 }
 0x45e   :  { %v3858_v57 = vsub.f32 %v3856_v26, %v3857_v56 }
 0x460   :  { %v3859_v59 = vand.u32 4294901760, %v3858_v57 }
 0x462   :  { %7039 = vmatmul.mubr.f32.vlgmr.msra.gmra.mrb[8].mxu1 %v9282_v17 }
 0x463   :  { %7791 = vmatpush3.bf16.xpose.msra.mxu1 %v7768_v52  ;;  %7045 = vmatprep.mubr.f32.mxu1 %v9278_v10  ;;  %v3216_v10 = vsub.f32 1.0, %v3214_v7 }
 0x46a   :  { %7046 = vmatmul.mubr.f32.vlgmr.msra.gmra.mrb[8].mxu1 %v9282_v17  ;;  %v3218_v17 = vmul.f32 -1e+09, %v3216_v10 }
 0x53d   :  { %v7047_v50 = vpop.f32.mrb[8].mxu1 }
 0x53e   :  { %v3177_v23 = vpop.f32.mrb[9].mxu1  ;;  %v3188_v16 = vmul.f32 0.17677669, %v7047_v50 }
 0x53f   :  { %v3187_v49 = vmul.f32 0.17677669, %v3177_v23 }
 0x540   :  { %v3220_v20 = vadd.f32 %v3218_v17, %v3188_v16 }
 0x541   :  { %v3219_v61 = vadd.f32 %v3217_v60, %v3187_v49  ;;  %v3872_v60 = vsub.f32 %v3870_v15, %v3871_v35 }
 0x542   :  { %v3225_v2 = vsel %vm3221_vm11, %v3220_v20, -inf }
 0x543   :  { %v3222_v58 = vsel %vm3221_vm11, %v3219_v61, -inf  ;;  %v3873_v16 = vand.u32 4294901760, %v3872_v60 }
 0x544   :  { %3223 = vmax.xlane.f32.xlu1 %v3222_v58 }
 0x548   :  { %3226 = vmax.xlane.f32.xlu1 %v3225_v2 }
 0x5d1   :  { %v3224_v9 = vpop.xlane.xlu1 %3223 }
 0x5d2   :  { %v3228_v45 = vsub.f32 %v3219_v61, %v3224_v9 }
 0x5d4   :  { %v3230_v51 = vmul.f32 1.442695, %v3228_v45 }
 0x5d5   :  { %v3227_v4 = vpop.xlane.xlu1 %3226 }
 0x5d6   :  { %8263 = vpow2.f32 %v3230_v51  ;;  %v3229_v44 = vsub.f32 %v3220_v20, %v3227_v4 }
 0x5d8   :  { %v3232_v34 = vmul.f32 1.442695, %v3229_v44 }
 0x5da   :  { %8265 = vpow2.f32 %v3232_v34 }
 0x5e0   :  { %v8264_v52 = vpop.eup %8263 }
 0x5e1   :  { %v3234_v12 = vsel %vm3221_vm11, %v8264_v52, 0.0 }
 0x5e2   :  { %3235 = vadd.xlane.f32.xlu1 %v3234_v12 }
 0x5e4   :  { %v8266_v28 = vpop.eup %8265 }
 0x5e5   :  { %v3237_v19 = vsel %vm3221_vm11, %v8266_v28, 0.0 }
 0x5e6   :  { %3238 = vadd.xlane.f32.xlu1 %v3237_v19 }
 0x66f   :  { %v3236_v29 = vpop.xlane.xlu1 %3235 }
 0x670   :  { %8267 = vrcp.f32 %v3236_v29 }
 0x673   :  { %v3239_v32 = vpop.xlane.xlu1 %3238 }
 0x674   :  { %8269 = vrcp.f32 %v3239_v32 }
 0x67a   :  { %v8268_v41 = vpop.eup %8267 }
 0x67b   :  { %v3241_v43 = vmul.f32 %v8268_v41, %v8264_v52 }
 0x67d   :  { %v3245_v46 = vsel %vm3221_vm11, %v3241_v43, 0 }
 0x67e   :  { %v8270_v1 = vpop.eup %8269  ;;  %v3317_v30 = vand.u32 4294901760, %v3245_v46 }
 0x67f   :  { %v3243_v33 = vmul.f32 %v8270_v1, %v8266_v28 }
 0x680   :  { %v3318_v24 = vsub.f32 %v3245_v46, %v3317_v30 }
 0x681   :  { %v3248_v47 = vsel %vm3221_vm11, %v3243_v33, 0 }
 0x682   :  { %v3319_v27 = vand.u32 4294901760, %v3318_v24  ;;  %v3327_v48 = vand.u32 4294901760, %v3248_v47 }
 0x684   :  { %v3320_v53 = vsub.f32 %v3318_v24, %v3319_v27  ;;  %v3328_v3 = vsub.f32 %v3248_v47, %v3327_v48 }
 0x686   :  { %v3321_v40 = vand.u32 4294901760, %v3320_v53  ;;  %v3329_v13 = vand.u32 4294901760, %v3328_v3 }
 0x688   :  { %7052 = vmatprep.mubr.f32.mxu0 %v3321_v40  ;;  %v3330_v14 = vsub.f32 %v3328_v3, %v3329_v13 }
 0x68a   :  { %v3331_v54 = vand.u32 4294901760, %v3330_v14 }
 0x68c   :  { %7053 = vmatmul.mubr.f32.vlgmr.msra.gmra.mrb[24].mxu0 %v3331_v54  ;;  %v90_v54 = vld [vmem:[%s9920_s3] sm:$0xff] }
 0x68d   :  { %7799 = vmatpush3.bf16.msra.mxu0 %v9297_v37  ;;  %7059 = vmatprep.mubr.f32.mxu0 %v3317_v30 }
 0x68e   :  { %7801 = vmatprep.subr.bf16.mxu0 %v9292_v21 }
 0x694   :  { %7060 = vmatmul.mubr.f32.vlgmr.msra.gmra.mrb[24].mxu0 %v3327_v48 }
 0x695   :  { %7803 = vmatpush3.bf16.msra.mxu0 %v9292_v21  ;;  %7066 = vmatprep.mubr.f32.mxu0 %v3318_v24  ;;  %v62_v21 = vld [vmem:[%s9919_s2 + $0x160] sm:$0xff] }
 0x696   :  { %7805 = vmatprep.subr.bf16.mxu0 %v9289_v5  ;;  %v3759_v6 = vand.u32 4294901760, %v62_v21 }
 0x698   :  { %v9334_v37 = vpack.c.bf16 %v3762_v18, %v3759_v6 }
 0x69a   :  { %7817 = vmatprep.subr.bf16.mxu1 %v9334_v37 }
 0x69b   :  { %7819 = vmatpush3.bf16.msra.mxu1 %v9334_v37 }
 0x69c   :  { %7067 = vmatmul.mubr.f32.vlgmr.msra.gmra.mrb[24].mxu0 %v3328_v3 }
 0x69d   :  { %7807 = vmatpush3.bf16.msra.mxu0 %v9289_v5  ;;  %7073 = vmatprep.mubr.f32.mxu0 %v3319_v27 }
 0x69e   :  { %7809 = vmatprep.subr.bf16.mxu0 %v9295_v8 }
 0x6a4   :  { %7074 = vmatmul.mubr.f32.vlgmr.msra.gmra.mrb[24].mxu0 %v3329_v13 }
 0x6a5   :  { %7811 = vmatpush3.bf16.msra.mxu0 %v9295_v8  ;;  %7080 = vmatprep.mubr.f32.mxu0 %v3317_v30  ;;  %v3849_v8 = vsub.f32 %v62_v21, %v3759_v6  ;;  %v91_v21 = vld [vmem:[%s9920_s3 + $0x18] sm:$0xff]  ;;  %v4333_v6 = vand.u32 4294901760, %v90_v54 }
 0x6a6   :  { %7813 = vmatprep.subr.bf16.mxu0 %v9289_v5  ;;  %v4336_v18 = vand.u32 4294901760, %v91_v21 }
 0x6a7   :  { %v3850_v55 = vand.u32 4294901760, %v3849_v8  ;;  %v7832_v17 = vpack.c.bf16 %v3856_v26, %v3849_v8 }
 0x6a9   :  { %v3851_v42 = vsub.f32 %v3849_v8, %v3850_v55  ;;  %v7848_v58 = vpack.c.bf16 %v3857_v56, %v3850_v55  ;;  %v4339_v8 = vand.u32 4294901760, %v92_v11 }
 0x6ab   :  { %v3852_v25 = vand.u32 4294901760, %v3851_v42  ;;  %v4437_v57 = vsub.f32 %v92_v11, %v4339_v8 }
 0x6ac   :  { %7081 = vmatmul.mubr.f32.vlgmr.msra.gmra.mrb[24].mxu0 %v3327_v48 }
 0x6ad   :  { %7815 = vmatpush3.bf16.msra.mxu0 %v9289_v5  ;;  %7087 = vmatprep.mubr.f32.mxu0 %v3317_v30  ;;  %v64_v5 = vld [vmem:[%s9919_s2 + $0x170] sm:$0xff]  ;;  %v7824_v10 = vpack.c.bf16 %v3859_v59, %v3852_v25  ;;  %v4438_v59 = vand.u32 4294901760, %v4437_v57 }
 0x6ae   :  { %v3765_v39 = vand.u32 4294901760, %v64_v5 }
 0x6b0   :  { %v9344_v62 = vpack.c.bf16 %v3768_v31, %v3765_v39  ;;  %v3863_v63 = vsub.f32 %v64_v5, %v3765_v39  ;;  %v9384_v5 = vpack.c.bf16 %v4336_v18, %v4333_v6  ;;  %v4423_v39 = vsub.f32 %v90_v54, %v4333_v6  ;;  %v67_v54 = vld [vmem:[%s9919_s2 + $0x188] sm:$0xff] }
 0x6b1   :  { %v4430_v31 = vsub.f32 %v91_v21, %v4336_v18  ;;  %v4882_v11 = vand.u32 4294901760, %v67_v54  ;;  %v68_v18 = vld [vmem:[%s9919_s2 + $0x190] sm:$0xff] }
 0x6b2   :  { %7821 = vmatprep.subr.bf16.mxu1 %v9344_v62  ;;  %v3864_v7 = vand.u32 4294901760, %v3863_v63  ;;  %v7836_v61 = vpack.c.bf16 %v3870_v15, %v3863_v63  ;;  %7865 = vmatprep.subr.bf16.mxu0 %v9384_v5  ;;  %v4424_v55 = vand.u32 4294901760, %v4423_v39 }
 0x6b3   :  { %7823 = vmatpush3.bf16.msra.mxu1 %v9344_v62  ;;  %v4431_v56 = vand.u32 4294901760, %v4430_v31 }
 0x6b4   :  { %7088 = vmatmul.mubr.f32.vlgmr.msra.gmra.mrb[24].mxu0 %v3327_v48  ;;  %v3865_v50 = vsub.f32 %v3863_v63, %v3864_v7  ;;  %7825 = vmatprep.subr.bf16.mxu1 %v7824_v10  ;;  %v7852_v20 = vpack.c.bf16 %v3871_v35, %v3864_v7 }
 0x6b5   :  { %7867 = vmatpush3.bf16.msra.mxu0 %v9384_v5  ;;  %v4432_v42 = vsub.f32 %v4430_v31, %v4431_v56 }
 0x6b6   :  { %v3866_v23 = vand.u32 4294901760, %v3865_v50 }
 0x6b7   :  { %v4433_v25 = vand.u32 4294901760, %v4432_v42  ;;  %v73_v42 = vld [vmem:[%s9919_s2 + $0x1b8] sm:$0xff] }
 0x6b8   :  { %v7828_v49 = vpack.c.bf16 %v3873_v16, %v3866_v23 }
 0x787   :  { %v7089_v2 = vpop.f32.mrb[24].mxu0 }
 0x788   :  { %v3756_v9 = vsel %vm1043_vm4, %v7089_v2, 0  ;;  %v3742_v45 = vpop.f32.mrb[25].mxu0 }
 0x789   :  { %v3837_v51 = vand.u32 4294901760, %v3756_v9  ;;  %v3753_v4 = vsel %vm1043_vm4, %v3742_v45, 0 }
 0x78a   :  { %v3827_v44 = vand.u32 4294901760, %v3753_v4 }
 0x78b   :  { %v3838_v34 = vsub.f32 %v3756_v9, %v3837_v51 }
 0x78c   :  { %v3828_v52 = vsub.f32 %v3753_v4, %v3827_v44 }
 0x78d   :  { %v3839_v12 = vand.u32 4294901760, %v3838_v34 }
 0x78e   :  { %v3829_v28 = vand.u32 4294901760, %v3828_v52 }
 0x78f   :  { %v3840_v19 = vsub.f32 %v3838_v34, %v3839_v12 }
 0x790   :  { %v3830_v29 = vsub.f32 %v3828_v52, %v3829_v28 }
 0x791   :  { %v3841_v41 = vand.u32 4294901760, %v3840_v19 }
 0x792   :  { %v3831_v32 = vand.u32 4294901760, %v3830_v29 }
 0x794   :  { %7098 = vmatprep.mubr.f32.mxu1 %v3831_v32 }
 0x795   :  { %7099 = vmatmul.mubr.f32.vlgmr.msra.gmra.mrb[10].mxu1 %v3841_v41 }
 0x796   :  { %7827 = vmatpush3.bf16.msra.mxu1 %v7824_v10  ;;  %7109 = vmatprep.mubr.f32.mxu1 %v3827_v44  ;;  %v4439_v10 = vsub.f32 %v4437_v57, %v4438_v59 }
 0x797   :  { %7829 = vmatprep.subr.bf16.mxu1 %v7828_v49 }
 0x798   :  { %v4440_v60 = vand.u32 4294901760, %v4439_v10 }
 0x79a   :  { %7831 = vmatpush3.bf16.msra.mxu1 %v7828_v49  ;;  %v7880_v49 = vpack.c.bf16 %v4430_v31, %v4423_v39 }
 0x79b   :  { %7833 = vmatprep.subr.bf16.mxu1 %v7832_v17 }
 0x79d   :  { %7110 = vmatmul.mubr.f32.vlgmr.msra.gmra.mrb[10].mxu1 %v3837_v51 }
 0x79e   :  { %7835 = vmatpush3.bf16.msra.mxu1 %v7832_v17  ;;  %7120 = vmatprep.mubr.f32.mxu1 %v3828_v52 }
 0x79f   :  { %7837 = vmatprep.subr.bf16.mxu1 %v7836_v61 }
 0x7a2   :  { %7839 = vmatpush3.bf16.msra.mxu1 %v7836_v61  ;;  %v7896_v61 = vpack.c.bf16 %v4431_v56, %v4424_v55 }
 0x7a3   :  { %7841 = vmatprep.subr.bf16.mxu1 %v9334_v37 }
 0x7a5   :  { %7121 = vmatmul.mubr.f32.vlgmr.msra.gmra.mrb[10].mxu1 %v3838_v34  ;;  %v6240_v34 = vld [vmem:[%s9919_s2 + $0x212] ss:$0 sm:$0xff] }
 0x7a6   :  { %7843 = vmatpush3.bf16.msra.mxu1 %v9334_v37  ;;  %7131 = vmatprep.mubr.f32.mxu1 %v3829_v28 }
 0x7a7   :  { %7845 = vmatprep.subr.bf16.mxu1 %v9344_v62 }
 0x7aa   :  { %7847 = vmatpush3.bf16.msra.mxu1 %v9344_v62 }
 0x7ab   :  { %7849 = vmatprep.subr.bf16.mxu1 %v7848_v58 }
 0x7ad   :  { %7132 = vmatmul.mubr.f32.vlgmr.msra.gmra.mrb[10].mxu1 %v3839_v12  ;;  %v6241_v12 = vld [vmem:[%s9919_s2 + $0x213] ss:$0 sm:$0xff] }
 0x7ae   :  { %7851 = vmatpush3.bf16.msra.mxu1 %v7848_v58  ;;  %7142 = vmatprep.mubr.f32.mxu1 %v3827_v44 }
 0x7af   :  { %7853 = vmatprep.subr.bf16.mxu1 %v7852_v20 }
 0x7b2   :  { %7855 = vmatpush3.bf16.msra.mxu1 %v7852_v20 }
 0x7b3   :  { %7857 = vmatprep.subr.bf16.mxu1 %v9334_v37 }
 0x7b5   :  { %7143 = vmatmul.mubr.f32.vlgmr.msra.gmra.mrb[10].mxu1 %v3837_v51 }
 0x7b6   :  { %7859 = vmatpush3.bf16.msra.mxu1 %v9334_v37  ;;  %7153 = vmatprep.mubr.f32.mxu1 %v3827_v44  ;;  %v93_v37 = vld [vmem:[%s9920_s3 + $0x48] sm:$0xff] }
 0x7b7   :  { %7861 = vmatprep.subr.bf16.mxu1 %v9344_v62  ;;  %v4342_v26 = vand.u32 4294901760, %v93_v37 }
 0x7b9   :  { %v9386_v38 = vpack.c.bf16 %v4342_v26, %v4339_v8  ;;  %v4444_v63 = vsub.f32 %v93_v37, %v4342_v26  ;;  %v69_v37 = vld [vmem:[%s9919_s2 + $0x198] sm:$0xff]  ;;  %v4885_v8 = vand.u32 4294901760, %v68_v18 }
 0x7ba   :  { %7863 = vmatpush3.bf16.msra.mxu1 %v9344_v62  ;;  %v4425_v62 = vsub.f32 %v4423_v39, %v4424_v55  ;;  %v4888_v26 = vand.u32 4294901760, %v69_v37  ;;  %v71_v39 = vld [vmem:[%s9919_s2 + $0x1a8] sm:$0xff] }
 0x7bb   :  { %7869 = vmatprep.subr.bf16.mxu0 %v9386_v38  ;;  %v4445_v7 = vand.u32 4294901760, %v4444_v63  ;;  %v7884_v17 = vpack.c.bf16 %v4444_v63, %v4437_v57  ;;  %v4894_v55 = vand.u32 4294901760, %v71_v39 }
 0x7bc   :  { %7871 = vmatpush3.bf16.msra.mxu0 %v9386_v38  ;;  %v4426_v15 = vand.u32 4294901760, %v4425_v62  ;;  %v72_v62 = vld [vmem:[%s9919_s2 + $0x1b0] sm:$0xff] }
 0x7bd   :  { %7154 = vmatmul.mubr.f32.vlgmr.msra.gmra.mrb[10].mxu1 %v3837_v51  ;;  %v4446_v50 = vsub.f32 %v4444_v63, %v4445_v7  ;;  %v7900_v58 = vpack.c.bf16 %v4445_v7, %v4438_v59  ;;  %v4897_v57 = vand.u32 4294901760, %v72_v62  ;;  %v4900_v63 = vand.u32 4294901760, %v73_v42  ;;  %v9455_v59 = vld [vmem:[%s9919_s2 + $0x1c8] sm:$0xff] }
 0x7be   :  { %v7872_v35 = vpack.c.bf16 %v4433_v25, %v4426_v15  ;;  %v9450_v25 = vld [vmem:[%s9919_s2 + $0x1c0] sm:$0xff] }
 0x7bf   :  { %v4447_v23 = vand.u32 4294901760, %v4446_v50  ;;  %v9445_v15 = vpack.c.bf16 %v4900_v63, %v4897_v57  ;;  %v4903_v7 = vand.u32 4294901760, %v9450_v25  ;;  %v9466_v50 = vld [vmem:[%s9919_s2 + $0x1d0] sm:$0xff] }
 0x7c0   :  { %7873 = vmatprep.subr.bf16.mxu0 %v7872_v35 }
 0x7c1   :  { %v7876_v16 = vpack.c.bf16 %v4447_v23, %v4440_v60  ;;  %v9471_v60 = vld [vmem:[%s9919_s2 + $0x1d8] sm:$0xff]  ;;  %v4909_v23 = vand.u32 4294901760, %v9466_v50 }
 0x890   :  { %v7155_v43 = vpop.f32.mrb[10].mxu1 }
 0x891   :  { %v4276_v46 = vpop.f32.mrb[11].mxu1  ;;  %v9362_v30 = vadd.f32 %v7155_v43, %v9037_v36 }
 0x892   :  { %v9359_v1 = vadd.f32 %v4276_v46, %v9033_v22 }
 0x893   :  { %v4291_v24 = vsel %vm1043_vm4, %v9362_v30, 0.0 }
 0x894   :  { %v4288_v33 = vsel %vm1043_vm4, %v9359_v1, 0.0 }
 0x895   :  { %4289 = vadd.xlane.f32.xlu1 %v4288_v33 }
 0x899   :  { %4292 = vadd.xlane.f32.xlu1 %v4291_v24 }
 0x922   :  { %v4290_v47 = vpop.xlane.xlu1 %4289 }
 0x923   :  { %v4294_v27 = vmul.f32 0.03125, %v4290_v47 }
 0x925   :  { %v4296_v48 = vsub.f32 %v9359_v1, %v4294_v27 }
 0x926   :  { %v4293_v53 = vpop.xlane.xlu1 %4292 }
 0x927   :  { %v4295_v3 = vmul.f32 0.03125, %v4293_v53  ;;  %v4298_v40 = vmul.f32 %v4296_v48, %v4296_v48 }
 0x929   :  { %v4297_v22 = vsub.f32 %v9362_v30, %v4295_v3  ;;  %v4300_v36 = vsel %vm1043_vm4, %v4298_v40, 0.0 }
 0x92a   :  { %4301 = vadd.xlane.f32.xlu1 %v4300_v36 }
 0x92b   :  { %v4299_v13 = vmul.f32 %v4297_v22, %v4297_v22 }
 0x92d   :  { %v4303_v14 = vsel %vm1043_vm4, %v4299_v13, 0.0 }
 0x92e   :  { %4304 = vadd.xlane.f32.xlu0 %v4303_v14 }
 0x9b7   :  { %v4302_v20 = vpop.xlane.xlu1 %4301 }
 0x9b8   :  { %v4306_v2 = vmul.f32 0.03125, %v4302_v20 }
 0x9ba   :  { %v4308_v9 = vadd.f32 1e-05, %v4306_v2 }
 0x9bb   :  { %v4305_v45 = vpop.xlane.xlu0 %4304 }
 0x9bc   :  { %8271 = vrsqrt.f32 %v4308_v9  ;;  %v4307_v51 = vmul.f32 0.03125, %v4305_v45  ;;  %v9506_v9 = vld [vmem:[%s9919_s2 + $0x1f0] sm:$0xff]  ;;  %v9511_v45 = vld [vmem:[%s9919_s2 + $0x1f8] sm:$0xff] }
 0x9be   :  { %v4309_v4 = vadd.f32 1e-05, %v4307_v51 }
 0x9c0   :  { %8273 = vrsqrt.f32 %v4309_v4  ;;  %v9515_v4 = vsub.f32 %v67_v54, %v4882_v11 }
 0x9c6   :  { %v8272_v44 = vpop.eup %8271 }
 0x9c7   :  { %v4312_v52 = vmul.f32 %v8272_v44, %v4296_v48  ;;  %v4921_v44 = vand.u32 4294901760, %v9506_v9 }
 0x9c9   :  { %v4318_v28 = vmul.f32 %v6240_v34, %v4312_v52 }
 0x9ca   :  { %v8274_v19 = vpop.eup %8273 }
 0x9cb   :  { %v4313_v29 = vmul.f32 %v8274_v19, %v4297_v22  ;;  %v4324_v32 = vadd.f32 %v6241_v12, %v4318_v28  ;;  %v66_v22 = vld [vmem:[%s9919_s2 + $0x180] sm:$0xff] }
 0x9cc   :  { %v4879_v21 = vand.u32 4294901760, %v66_v22 }
 0x9cd   :  { %v4319_v41 = vmul.f32 %v6240_v34, %v4313_v29  ;;  %v4327_v43 = vsel %vm1043_vm4, %v4324_v32, 0  ;;  %v4924_v34 = vand.u32 4294901760, %v9511_v45  ;;  %v9535_v32 = vsub.f32 %v68_v18, %v4885_v8 }
 0x9ce   :  { %v4401_v46 = vand.u32 4294901760, %v4327_v43  ;;  %v9415_v6 = vpack.c.bf16 %v4882_v11, %v4879_v21  ;;  %v9513_v51 = vsub.f32 %v66_v22, %v4879_v21  ;;  %v9563_v21 = vsub.f32 %v72_v62, %v4897_v57 }
 0x9cf   :  { %v4325_v33 = vadd.f32 %v6241_v12, %v4319_v41  ;;  %v9992_v12 = vand.u32 4294901760, %v9515_v4  ;;  %v9527_v28 = vpack.c.bf16 %v4924_v34, %v4921_v44  ;;  %v9537_v41 = vsub.f32 %v69_v37, %v4888_v26 }
 0x9d0   :  { %v4402_v24 = vsub.f32 %v4327_v43, %v4401_v46  ;;  %7913 = vmatprep.subr.bf16.mxu1 %v9415_v6  ;;  %v9993_v52 = vand.u32 4294901760, %v9513_v51  ;;  %v9565_v11 = vsub.f32 %v73_v42, %v4900_v63 }
 0x9d1   :  { %v4330_v47 = vsel %vm1043_vm4, %v4325_v33, 0  ;;  %7915 = vmatpush3.bf16.msra.mxu1 %v9415_v6  ;;  %v4990_v29 = vsub.f32 %v9515_v4, %v9992_v12  ;;  %v9991_v33 = vand.u32 4294901760, %v9535_v32 }
 0x9d2   :  { %v4403_v27 = vand.u32 4294901760, %v4402_v24  ;;  %v4411_v53 = vand.u32 4294901760, %v4330_v47  ;;  %v4983_v19 = vsub.f32 %v9513_v51, %v9993_v52 }
 0x9d4   :  { %v4404_v3 = vsub.f32 %v4402_v24, %v4403_v27  ;;  %v4412_v48 = vsub.f32 %v4330_v47, %v4411_v53  ;;  %v4984_v43 = vand.u32 4294901760, %v4983_v19 }
 0x9d6   :  { %v4405_v40 = vand.u32 4294901760, %v4404_v3  ;;  %v4413_v36 = vand.u32 4294901760, %v4412_v48 }
 0x9d8   :  { %7164 = vmatprep.mubr.f32.mxu0 %v4405_v40  ;;  %v4414_v13 = vsub.f32 %v4412_v48, %v4413_v36 }
 0x9da   :  { %v4415_v14 = vand.u32 4294901760, %v4414_v13 }
 0x9dc   :  { %7165 = vmatmul.mubr.f32.vlgmr.msra.gmra.mrb[26].mxu0 %v4415_v14 }
 0x9dd   :  { %7875 = vmatpush3.bf16.msra.mxu0 %v7872_v35  ;;  %7175 = vmatprep.mubr.f32.mxu0 %v4401_v46  ;;  %v4906_v35 = vand.u32 4294901760, %v9455_v59 }
 0x9de   :  { %7877 = vmatprep.subr.bf16.mxu0 %v7876_v16 }
 0x9df   :  { %v9461_v10 = vpack.c.bf16 %v4906_v35, %v4903_v7  ;;  %v9582_v62 = vsub.f32 %v9455_v59, %v4906_v35  ;;  %v9599_v59 = vsub.f32 %v9466_v50, %v4909_v23 }
 0x9e1   :  { %7879 = vmatpush3.bf16.msra.mxu0 %v7876_v16  ;;  %v4912_v16 = vand.u32 4294901760, %v9471_v60 }
 0x9e2   :  { %7881 = vmatprep.subr.bf16.mxu0 %v7880_v49 }
 0x9e4   :  { %7176 = vmatmul.mubr.f32.vlgmr.msra.gmra.mrb[26].mxu0 %v4411_v53 }
 0x9e5   :  { %7883 = vmatpush3.bf16.msra.mxu0 %v7880_v49  ;;  %7186 = vmatprep.mubr.f32.mxu0 %v4402_v24  ;;  %v9481_v49 = vpack.c.bf16 %v4912_v16, %v4909_v23  ;;  %v9990_v24 = vand.u32 4294901760, %v9537_v41 }
 0x9e6   :  { %7885 = vmatprep.subr.bf16.mxu0 %v7884_v17 }
 0x9e9   :  { %7887 = vmatpush3.bf16.msra.mxu0 %v7884_v17  ;;  %v9486_v17 = vld [vmem:[%s9919_s2 + $0x1e0] sm:$0xff] }
 0x9ea   :  { %7889 = vmatprep.subr.bf16.mxu0 %v9384_v5 }
 0x9ec   :  { %7187 = vmatmul.mubr.f32.vlgmr.msra.gmra.mrb[26].mxu0 %v4412_v48  ;;  %v9553_v48 = vsub.f32 %v71_v39, %v4894_v55 }
 0x9ed   :  { %7891 = vmatpush3.bf16.msra.mxu0 %v9384_v5  ;;  %7197 = vmatprep.mubr.f32.mxu0 %v4403_v27  ;;  %v4997_v27 = vsub.f32 %v9535_v32, %v9991_v33 }
 0x9ee   :  { %7893 = vmatprep.subr.bf16.mxu0 %v9386_v38  ;;  %v9988_v14 = vand.u32 4294901760, %v9553_v48 }
 0x9ef   :  { %v4998_v40 = vand.u32 4294901760, %v4997_v27 }
 0x9f0   :  { %v5018_v18 = vsub.f32 %v9553_v48, %v9988_v14 }
 0x9f1   :  { %7895 = vmatpush3.bf16.msra.mxu0 %v9386_v38 }
 0x9f2   :  { %7897 = vmatprep.subr.bf16.mxu0 %v7896_v61 }
 0x9f4   :  { %7198 = vmatmul.mubr.f32.vlgmr.msra.gmra.mrb[26].mxu0 %v4413_v36 }
 0x9f5   :  { %7899 = vmatpush3.bf16.msra.mxu0 %v7896_v61  ;;  %7208 = vmatprep.mubr.f32.mxu0 %v4401_v46  ;;  %v9491_v61 = vld [vmem:[%s9919_s2 + $0x1e8] sm:$0xff] }
 0x9f6   :  { %7901 = vmatprep.subr.bf16.mxu0 %v7900_v58  ;;  %v4918_v20 = vand.u32 4294901760, %v9491_v61 }
 0x9f9   :  { %7903 = vmatpush3.bf16.msra.mxu0 %v7900_v58  ;;  %v4915_v58 = vand.u32 4294901760, %v9486_v17 }
 0x9fa   :  { %7905 = vmatprep.subr.bf16.mxu0 %v9384_v5 }
 0x9fb   :  { %v9501_v2 = vpack.c.bf16 %v4918_v20, %v4915_v58  ;;  %v9616_v50 = vsub.f32 %v9486_v17, %v4915_v58 }
 0x9fc   :  { %7209 = vmatmul.mubr.f32.vlgmr.msra.gmra.mrb[26].mxu0 %v4411_v53 }
 0x9fd   :  { %7907 = vmatpush3.bf16.msra.mxu0 %v9384_v5  ;;  %7219 = vmatprep.mubr.f32.mxu0 %v4401_v46  ;;  %v9425_v5 = vpack.c.bf16 %v4888_v26, %v4885_v8  ;;  %v4991_v46 = vand.u32 4294901760, %v4990_v29  ;;  %v9987_v8 = vand.u32 4294901760, %v9563_v21  ;;  %v9986_v26 = vand.u32 4294901760, %v9565_v11 }
 0x9fe   :  { %7909 = vmatprep.subr.bf16.mxu0 %v9386_v38  ;;  %v9984_v29 = vand.u32 4294901760, %v9582_v62 }
 0x9ff   :  { %7917 = vmatprep.subr.bf16.mxu1 %v9425_v5  ;;  %v9543_v47 = vpack.c.bf16 %v4991_v46, %v4984_v43  ;;  %v5025_v39 = vsub.f32 %v9563_v21, %v9987_v8 }
 0xa00   :  { %7919 = vmatpush3.bf16.msra.mxu1 %v9425_v5 }
 0xa01   :  { %7911 = vmatpush3.bf16.msra.mxu0 %v9386_v38  ;;  %v70_v38 = vld [vmem:[%s9919_s2 + $0x1a0] sm:$0xff]  ;;  %v5026_v57 = vand.u32 4294901760, %v5025_v39 }
 0xa02   :  { %v4891_v31 = vand.u32 4294901760, %v70_v38 }
 0xa04   :  { %7220 = vmatmul.mubr.f32.vlgmr.msra.gmra.mrb[26].mxu0 %v4411_v53  ;;  %v9435_v56 = vpack.c.bf16 %v4894_v55, %v4891_v31  ;;  %v5004_v53 = vsub.f32 %v9537_v41, %v9990_v24  ;;  %v9551_v3 = vsub.f32 %v70_v38, %v4891_v31  ;;  %v5019_v38 = vand.u32 4294901760, %v5018_v18 }
 0xa05   :  { %5680 = vmatprep.mubr.f32.mxu0 %v10081_v0  ;;  %v5032_v31 = vsub.f32 %v9565_v11, %v9986_v26  ;;  %v9579_v55 = vsub.f32 %v9450_v25, %v4903_v7  ;;  %v5046_v25 = vsub.f32 %v9582_v62, %v9984_v29  ;;  %v9604_v7 = vsub.f32 %v9471_v60, %v4912_v16 }
 0xa06   :  { %7921 = vmatprep.subr.bf16.mxu1 %v9435_v56  ;;  %v5005_v36 = vand.u32 4294901760, %v5004_v53  ;;  %v9989_v13 = vand.u32 4294901760, %v9551_v3  ;;  %v9983_v53 = vand.u32 4294901760, %v9599_v59  ;;  %v9621_v60 = vsub.f32 %v9491_v61, %v4918_v20 }
 0xa07   :  { %7923 = vmatpush3.bf16.msra.mxu1 %v9435_v56  ;;  %v5033_v63 = vand.u32 4294901760, %v5032_v31  ;;  %v9985_v19 = vand.u32 4294901760, %v9579_v55  ;;  %v5047_v27 = vand.u32 4294901760, %v5046_v25  ;;  %v9981_v18 = vand.u32 4294901760, %v9616_v50 }
 0xa08   :  { %7925 = vmatprep.subr.bf16.mxu1 %v9445_v15  ;;  %v9558_v22 = vpack.c.bf16 %v5005_v36, %v4998_v40  ;;  %v5011_v54 = vsub.f32 %v9551_v3, %v9989_v13  ;;  %v9982_v40 = vand.u32 4294901760, %v9604_v7  ;;  %v9637_v61 = vsub.f32 %v9506_v9, %v4921_v44 }
 0xa09   :  { %v9588_v43 = vpack.c.bf16 %v5033_v63, %v5026_v57  ;;  %v5039_v46 = vsub.f32 %v9579_v55, %v9985_v19  ;;  %v5067_v17 = vsub.f32 %v9616_v50, %v9981_v18  ;;  %v9642_v20 = vsub.f32 %v9511_v45, %v4924_v34 }
 0xa0a   :  { %v5012_v37 = vand.u32 4294901760, %v5011_v54  ;;  %v5053_v54 = vsub.f32 %v9599_v59, %v9983_v53  ;;  %v5060_v23 = vsub.f32 %v9604_v7, %v9982_v40  ;;  %v9979_v63 = vand.u32 4294901760, %v9637_v61 }
 0xa0b   :  { %7927 = vmatpush3.bf16.msra.mxu1 %v9445_v15  ;;  %v5040_v35 = vand.u32 4294901760, %v5039_v46  ;;  %v5068_v31 = vand.u32 4294901760, %v5067_v17  ;;  %v9978_v46 = vand.u32 4294901760, %v9642_v20  ;;  %v9670_v17 = vpack.c.bf16 %v9604_v7, %v9599_v59 }
 0xa0c   :  { %7929 = vmatprep.subr.bf16.mxu1 %v9461_v10  ;;  %v9584_v42 = vpack.c.bf16 %v5019_v38, %v5012_v37  ;;  %v5054_v16 = vand.u32 4294901760, %v5053_v54  ;;  %v9980_v37 = vand.u32 4294901760, %v9621_v60  ;;  %v5061_v38 = vand.u32 4294901760, %v5060_v23 }
 0xa0d   :  { %v9608_v36 = vpack.c.bf16 %v5047_v27, %v5040_v35  ;;  %v5081_v35 = vsub.f32 %v9637_v61, %v9979_v63  ;;  %v5088_v9 = vsub.f32 %v9642_v20, %v9978_v46  ;;  %v7976_v27 = vpack.c.bf16 %v9515_v4, %v9513_v51 }
 0xa0e   :  { %v5074_v58 = vsub.f32 %v9621_v60, %v9980_v37  ;;  %v9644_v39 = vpack.c.bf16 %v5061_v38, %v5054_v16  ;;  %v7980_v54 = vpack.c.bf16 %v9537_v41, %v9535_v32  ;;  %v7984_v23 = vpack.c.bf16 %v9553_v48, %v9551_v3 }
 0xa0f   :  { %7931 = vmatpush3.bf16.msra.mxu1 %v9461_v10  ;;  %v5082_v44 = vand.u32 4294901760, %v5081_v35  ;;  %v5089_v45 = vand.u32 4294901760, %v5088_v9  ;;  %v9662_v16 = vpack.c.bf16 %v9565_v11, %v9563_v21  ;;  %v9666_v38 = vpack.c.bf16 %v9582_v62, %v9579_v55 }
 0xa10   :  { %7933 = vmatprep.subr.bf16.mxu1 %v9481_v49  ;;  %v5075_v57 = vand.u32 4294901760, %v5074_v58  ;;  %v9674_v58 = vpack.c.bf16 %v9621_v60, %v9616_v50 }
 0xa11   :  { %v7972_v34 = vpack.c.bf16 %v5089_v45, %v5082_v44 }
 0xa12   :  { %v7968_v25 = vpack.c.bf16 %v5075_v57, %v5068_v31  ;;  %v9678_v31 = vpack.c.bf16 %v9642_v20, %v9637_v61 }
 0xa13   :  { %7935 = vmatpush3.bf16.msra.mxu1 %v9481_v49 }
 0xa14   :  { %7937 = vmatprep.subr.bf16.mxu1 %v9501_v2 }
 0xa17   :  { %7939 = vmatpush3.bf16.msra.mxu1 %v9501_v2 }
 0xa18   :  { %7941 = vmatprep.subr.bf16.mxu1 %v9527_v28 }
 0xa1b   :  { %7943 = vmatpush3.bf16.msra.mxu1 %v9527_v28 }
 0xa1c   :  { %7945 = vmatprep.subr.bf16.mxu1 %v9543_v47 }
 0xad7   :  { %v7221_v57 = vpop.f32.mrb[26].mxu0 }
 0xad8   :  { %v4861_v35 = vmul.f32 %v7221_v57, %v7221_v57  ;;  %v4850_v9 = vpop.f32.mrb[27].mxu0 }
 0xad9   :  { %v4860_v44 = vmul.f32 %v4850_v9, %v4850_v9 }
 0xada   :  { %v4863_v45 = vmul.f32 %v7221_v57, %v4861_v35 }
 0xadb   :  { %v4862_v46 = vmul.f32 %v4860_v44, %v4850_v9  ;;  %v98_v44 = vld [vmem:[%s9920_s3 + $0x38] sm:$0xff] }
 0xadc   :  { %v4865_v63 = vmul.f32 0.044715, %v4863_v45  ;;  %v100_v45 = vld [vmem:[%s9920_s3 + $0x50] sm:$0xff] }
 0xadd   :  { %v4864_v37 = vmul.f32 0.044715, %v4862_v46 }
 0xade   :  { %v4867_v18 = vadd.f32 %v7221_v57, %v4865_v63 }
 0xadf   :  { %v4866_v40 = vadd.f32 %v4864_v37, %v4850_v9 }
 0xae0   :  { %v4869_v53 = vmul.f32 0.7978846, %v4867_v18 }
 0xae1   :  { %v4868_v29 = vmul.f32 0.7978846, %v4866_v40  ;;  %v10090_v40 = vand.u32 4294901760, %v9579_v55  ;;  %v10096_v55 = vand.u32 4294901760, %v9637_v61 }
 0xae2   :  { %8275 = vtanh.f32 %v4869_v53 }
 0xae3   :  { %8277 = vtanh.f32 %v4868_v29 }
 0xaec   :  { %v8276_v19 = vpop.eup %8275 }
 0xaed   :  { %v8278_v26 = vpop.eup %8277  ;;  %v4873_v8 = vadd.f32 1.0, %v8276_v19 }
 0xaee   :  { %v4872_v14 = vadd.f32 1.0, %v8278_v26 }
 0xaef   :  { %v4875_v13 = vmul.f32 0.5, %v4873_v8 }
 0xaf0   :  { %v4874_v24 = vmul.f32 0.5, %v4872_v14 }
 0xaf1   :  { %v4877_v33 = vmul.f32 %v7221_v57, %v4875_v13 }
 0xaf2   :  { %v4876_v12 = vmul.f32 %v4874_v24, %v4850_v9 }
 0xaf3   :  { %v9680_v52 = vand.u32 4294901760, %v4877_v33 }
 0xaf4   :  { %v9682_v35 = vand.u32 4294901760, %v4876_v12 }
 0xaf5   :  { %v9685_v46 = vsub.f32 %v4877_v33, %v9680_v52  ;;  %v10083_v33 = vand.u32 4294901760, %v9515_v4  ;;  %v10087_v4 = vand.u32 4294901760, %v9553_v48  ;;  %v10093_v48 = vand.u32 4294901760, %v9604_v7 }
 0xaf6   :  { %v4960_v18 = vsub.f32 %v4876_v12, %v9682_v35  ;;  %v10082_v12 = vand.u32 4294901760, %v9513_v51  ;;  %v10086_v51 = vand.u32 4294901760, %v9551_v3  ;;  %v10092_v3 = vand.u32 4294901760, %v9599_v59 }
 0xaf7   :  { %v4971_v53 = vand.u32 4294901760, %v9685_v46 }
 0xaf8   :  { %v4961_v29 = vand.u32 4294901760, %v4960_v18  ;;  %v8040_v24 = vpack.c.bf16 %v10083_v33, %v10082_v12  ;;  %v8048_v19 = vpack.c.bf16 %v10087_v4, %v10086_v51  ;;  %v5618_v12 = vand.u32 4294901760, %v98_v44 }
 0xaf9   :  { %v4972_v26 = vsub.f32 %v9685_v46, %v4971_v53  ;;  %v5622_v33 = vand.u32 4294901760, %v100_v45 }
 0xafa   :  { %v4962_v8 = vsub.f32 %v4960_v18, %v4961_v29 }
 0xafb   :  { %v4973_v13 = vand.u32 4294901760, %v4972_v26 }
 0xafc   :  { %v4963_v14 = vand.u32 4294901760, %v4962_v8 }
 0xafe   :  { %7254 = vmatprep.mubr.f32.mxu1 %v4963_v14 }
 0xaff   :  { %7255 = vmatmul.mubr.f32.vlgmr.msra.gmra.mrb[12].mxu1 %v4973_v13 }
 0xb00   :  { %7947 = vmatpush3.bf16.msra.mxu1 %v9543_v47  ;;  %7289 = vmatprep.mubr.f32.mxu1 %v9682_v35  ;;  %v10084_v47 = vand.u32 4294901760, %v9535_v32  ;;  %v10089_v32 = vand.u32 4294901760, %v9565_v11  ;;  %v10095_v11 = vand.u32 4294901760, %v9621_v60 }
 0xb01   :  { %7949 = vmatprep.subr.bf16.mxu1 %v9558_v22 }
 0xb04   :  { %7951 = vmatpush3.bf16.msra.mxu1 %v9558_v22  ;;  %v10085_v22 = vand.u32 4294901760, %v9537_v41 }
 0xb05   :  { %7953 = vmatprep.subr.bf16.mxu1 %v9584_v42 }
 0xb08   :  { %7955 = vmatpush3.bf16.msra.mxu1 %v9584_v42  ;;  %v8044_v42 = vpack.c.bf16 %v10085_v22, %v10084_v47  ;;  %v9847_v47 = vsub.f32 %v98_v44, %v5618_v12  ;;  %v9849_v22 = vsub.f32 %v100_v45, %v5622_v33 }
 0xb09   :  { %7957 = vmatprep.subr.bf16.mxu1 %v9588_v43 }
 0xb0c   :  { %7959 = vmatpush3.bf16.msra.mxu1 %v9588_v43  ;;  %v10088_v43 = vand.u32 4294901760, %v9563_v21  ;;  %v10094_v21 = vand.u32 4294901760, %v9616_v50 }
 0xb0d   :  { %7961 = vmatprep.subr.bf16.mxu1 %v9608_v36 }
 0xb0e   :  { %v8052_v41 = vpack.c.bf16 %v10089_v32, %v10088_v43  ;;  %v8064_v63 = vpack.c.bf16 %v10095_v11, %v10094_v21  ;;  %v5735_v11 = vand.u32 4294901760, %v9847_v47 }
 0xb10   :  { %7963 = vmatpush3.bf16.msra.mxu1 %v9608_v36  ;;  %v10091_v36 = vand.u32 4294901760, %v9582_v62  ;;  %v10097_v62 = vand.u32 4294901760, %v9642_v20  ;;  %v95_v20 = vld [vmem:[%s9920_s3 + $0x10] sm:$0xff] }
 0xb11   :  { %7965 = vmatprep.subr.bf16.mxu1 %v9644_v39 }
 0xb12   :  { %v8056_v37 = vpack.c.bf16 %v10091_v36, %v10090_v40 }
 0xb14   :  { %7967 = vmatpush3.bf16.msra.mxu1 %v9644_v39  ;;  %v8060_v39 = vpack.c.bf16 %v10093_v48, %v10092_v3 }
 0xb15   :  { %7969 = vmatprep.subr.bf16.mxu1 %v7968_v25 }
 0xb18   :  { %7971 = vmatpush3.bf16.msra.mxu1 %v7968_v25  ;;  %v8068_v25 = vpack.c.bf16 %v10097_v62, %v10096_v55 }
 0xb19   :  { %7973 = vmatprep.subr.bf16.mxu1 %v7972_v34 }
 0xb1c   :  { %7975 = vmatpush3.bf16.msra.mxu1 %v7972_v34  ;;  %v97_v34 = vld [vmem:[%s9920_s3 + $0x28] sm:$0xff] }
 0xb1d   :  { %7977 = vmatprep.subr.bf16.mxu1 %v7976_v27 }
 0xb1f   :  { %7290 = vmatmul.mubr.f32.vlgmr.msra.gmra.mrb[12].mxu1 %v9680_v52 }
 0xb20   :  { %7979 = vmatpush3.bf16.msra.mxu1 %v7976_v27  ;;  %7324 = vmatprep.mubr.f32.mxu1 %v4960_v18  ;;  %v94_v27 = vld [vmem:[%s9920_s3 + $0x8] sm:$0xff] }
 0xb21   :  { %7981 = vmatprep.subr.bf16.mxu1 %v7980_v54 }
 0xb24   :  { %7983 = vmatpush3.bf16.msra.mxu1 %v7980_v54  ;;  %v5608_v54 = vand.u32 4294901760, %v95_v20 }
 0xb25   :  { %7985 = vmatprep.subr.bf16.mxu1 %v7984_v23 }
 0xb28   :  { %7987 = vmatpush3.bf16.msra.mxu1 %v7984_v23  ;;  %v5612_v23 = vand.u32 4294901760, %v97_v34 }
 0xb29   :  { %7989 = vmatprep.subr.bf16.mxu1 %v9662_v16 }
 0xb2a   :  { %v9828_v18 = vsub.f32 %v97_v34, %v5612_v23 }
 0xb2c   :  { %7991 = vmatpush3.bf16.msra.mxu1 %v9662_v16  ;;  %v96_v16 = vld [vmem:[%s9920_s3 + $0x20] sm:$0xff]  ;;  %v5717_v51 = vand.u32 4294901760, %v9828_v18 }
 0xb2d   :  { %7993 = vmatprep.subr.bf16.mxu1 %v9666_v38 }
 0xb2e   :  { %v5718_v32 = vsub.f32 %v9828_v18, %v5717_v51 }
 0xb30   :  { %7995 = vmatpush3.bf16.msra.mxu1 %v9666_v38  ;;  %v5610_v38 = vand.u32 4294901760, %v94_v27 }
 0xb31   :  { %7997 = vmatprep.subr.bf16.mxu1 %v9670_v17 }
 0xb34   :  { %7999 = vmatpush3.bf16.msra.mxu1 %v9670_v17  ;;  %v99_v17 = vld [vmem:[%s9920_s3 + $0x40] sm:$0xff] }
 0xb35   :  { %8001 = vmatprep.subr.bf16.mxu1 %v9674_v58  ;;  %v5616_v57 = vand.u32 4294901760, %v99_v17 }
 0xb37   :  { %v9838_v14 = vsub.f32 %v99_v17, %v5616_v57 }
 0xb38   :  { %8003 = vmatpush3.bf16.msra.mxu1 %v9674_v58  ;;  %v101_v58 = vld [vmem:[%s9920_s3 + $0x58] sm:$0xff] }
 0xb39   :  { %8005 = vmatprep.subr.bf16.mxu1 %v9678_v31  ;;  %v5620_v9 = vand.u32 4294901760, %v101_v58  ;;  %v5729_v3 = vand.u32 4294901760, %v9838_v14 }
 0xb3b   :  { %v9836_v8 = vpack.c.bf16 %v5620_v9, %v5616_v57  ;;  %v9841_v13 = vsub.f32 %v101_v58, %v5620_v9  ;;  %v5730_v62 = vsub.f32 %v9838_v14, %v5729_v3  ;;  %v6242_v57 = vld [vmem:[%s9919_s2 + $0x214] ss:$0 sm:$0xff] }
 0xb3c   :  { %8007 = vmatpush3.bf16.msra.mxu1 %v9678_v31  ;;  %v5614_v31 = vand.u32 4294901760, %v96_v16 }
 0xb3d   :  { %8009 = vmatprep.subr.bf16.mxu1 %v9415_v6  ;;  %v5741_v48 = vand.u32 4294901760, %v9841_v13 }
 0xb3e   :  { %v9834_v26 = vsub.f32 %v96_v16, %v5614_v31 }
 0xb3f   :  { %7325 = vmatmul.mubr.f32.vlgmr.msra.gmra.mrb[12].mxu1 %v9685_v46  ;;  %v9826_v46 = vsub.f32 %v95_v20, %v5608_v54  ;;  %v8140_v34 = vpack.c.bf16 %v5741_v48, %v5729_v3 }
 0xb40   :  { %8011 = vmatpush3.bf16.msra.mxu1 %v9415_v6  ;;  %7359 = vmatprep.mubr.f32.mxu1 %v4961_v29  ;;  %v9832_v29 = vpack.c.bf16 %v5614_v31, %v5610_v38 }
 0xb41   :  { %8013 = vmatprep.subr.bf16.mxu1 %v9425_v5 }
 0xb44   :  { %8015 = vmatpush3.bf16.msra.mxu1 %v9425_v5 }
 0xb45   :  { %8017 = vmatprep.subr.bf16.mxu1 %v9435_v56 }
 0xb48   :  { %8019 = vmatpush3.bf16.msra.mxu1 %v9435_v56 }
 0xb49   :  { %8021 = vmatprep.subr.bf16.mxu1 %v9445_v15 }
 0xb4c   :  { %8023 = vmatpush3.bf16.msra.mxu1 %v9445_v15 }
 0xb4d   :  { %8025 = vmatprep.subr.bf16.mxu1 %v9461_v10 }
 0xb50   :  { %8027 = vmatpush3.bf16.msra.mxu1 %v9461_v10 }
 0xb51   :  { %8029 = vmatprep.subr.bf16.mxu1 %v9481_v49 }
 0xb54   :  { %8031 = vmatpush3.bf16.msra.mxu1 %v9481_v49 }
 0xb55   :  { %8033 = vmatprep.subr.bf16.mxu1 %v9501_v2 }
 0xb58   :  { %8035 = vmatpush3.bf16.msra.mxu1 %v9501_v2 }
 0xb59   :  { %8037 = vmatprep.subr.bf16.mxu1 %v9527_v28 }
 0xb5c   :  { %8039 = vmatpush3.bf16.msra.mxu1 %v9527_v28 }
 0xb5d   :  { %8041 = vmatprep.subr.bf16.mxu1 %v8040_v24 }
 0xb5f   :  { %7360 = vmatmul.mubr.f32.vlgmr.msra.gmra.mrb[12].mxu1 %v4971_v53  ;;  %v9830_v53 = vsub.f32 %v94_v27, %v5610_v38 }
 0xb60   :  { %8043 = vmatpush3.bf16.msra.mxu1 %v8040_v24  ;;  %7394 = vmatprep.mubr.f32.mxu1 %v9682_v35  ;;  %v9845_v24 = vpack.c.bf16 %v5622_v33, %v5618_v12 }
 0xb61   :  { %8045 = vmatprep.subr.bf16.mxu1 %v8044_v42  ;;  %v5711_v4 = vand.u32 4294901760, %v9830_v53 }
 0xb64   :  { %8047 = vmatpush3.bf16.msra.mxu1 %v8044_v42  ;;  %v5705_v42 = vand.u32 4294901760, %v9826_v46 }
 0xb65   :  { %8049 = vmatprep.subr.bf16.mxu1 %v8048_v19 }
 0xb66   :  { %v5706_v43 = vsub.f32 %v9826_v46, %v5705_v42 }
 0xb68   :  { %8051 = vmatpush3.bf16.msra.mxu1 %v8048_v19  ;;  %v5723_v19 = vand.u32 4294901760, %v9834_v26  ;;  %v5707_v36 = vand.u32 4294901760, %v5706_v43 }
 0xb69   :  { %8053 = vmatprep.subr.bf16.mxu1 %v8052_v41 }
 0xb6a   :  { %v5724_v40 = vsub.f32 %v9834_v26, %v5723_v19  ;;  %v8138_v20 = vpack.c.bf16 %v5723_v19, %v5711_v4 }
 0xb6c   :  { %8055 = vmatpush3.bf16.msra.mxu1 %v8052_v41  ;;  %v5712_v41 = vsub.f32 %v9830_v53, %v5711_v4  ;;  %v5725_v21 = vand.u32 4294901760, %v5724_v40 }
 0xb6d   :  { %8057 = vmatprep.subr.bf16.mxu1 %v8056_v37 }
 0xb70   :  { %8059 = vmatpush3.bf16.msra.mxu1 %v8056_v37  ;;  %v5719_v37 = vand.u32 4294901760, %v5718_v32 }
 0xb71   :  { %8061 = vmatprep.subr.bf16.mxu1 %v8060_v39 }
 0xb72   :  { %v8112_v55 = vpack.c.bf16 %v5719_v37, %v5707_v36 }
 0xb74   :  { %8063 = vmatpush3.bf16.msra.mxu1 %v8060_v39  ;;  %v5713_v39 = vand.u32 4294901760, %v5712_v41 }
 0xb75   :  { %8065 = vmatprep.subr.bf16.mxu1 %v8064_v63 }
 0xb78   :  { %8067 = vmatpush3.bf16.msra.mxu1 %v8064_v63  ;;  %v5747_v63 = vand.u32 4294901760, %v9849_v22 }
 0xb79   :  { %8069 = vmatprep.subr.bf16.mxu1 %v8068_v25 }
 0xb7a   :  { %v8142_v27 = vpack.c.bf16 %v5747_v63, %v5735_v11 }
 0xb7c   :  { %8071 = vmatpush3.bf16.msra.mxu1 %v8068_v25  ;;  %v5742_v25 = vsub.f32 %v9841_v13, %v5741_v48 }
 0xb7d   :  { %8073 = vmatprep.subr.bf16.mxu1 %v9415_v6 }
 0xb7f   :  { %7395 = vmatmul.mubr.f32.vlgmr.msra.gmra.mrb[12].mxu1 %v9680_v52 }
 0xb80   :  { %8075 = vmatpush3.bf16.msra.mxu1 %v9415_v6  ;;  %7429 = vmatprep.mubr.f32.mxu1 %v9682_v35  ;;  %v9824_v35 = vpack.c.bf16 %v5612_v23, %v5608_v54 }
 0xb81   :  { %8077 = vmatprep.subr.bf16.mxu1 %v9425_v5 }
 0xb82   :  { %8105 = vmatprep.subr.bf16.mxu0 %v9824_v35 }
 0xb83   :  { %8107 = vmatpush1.bf16.msra.mxu0 %v9832_v29 }
 0xb84   :  { %8079 = vmatpush3.bf16.msra.mxu1 %v9425_v5  ;;  %8109 = vmatprep.subr.bf16.mxu0 %v9836_v8 }
 0xb85   :  { %8081 = vmatprep.subr.bf16.mxu1 %v9435_v56 }
 0xb87   :  { %8111 = vmatpush1.bf16.msra.mxu0 %v9845_v24 }
 0xb88   :  { %8083 = vmatpush3.bf16.msra.mxu1 %v9435_v56  ;;  %8113 = vmatprep.subr.bf16.mxu0 %v8112_v55 }
 0xb89   :  { %8085 = vmatprep.subr.bf16.mxu1 %v9445_v15 }
 0xb8c   :  { %8087 = vmatpush3.bf16.msra.mxu1 %v9445_v15 }
 0xb8d   :  { %8089 = vmatprep.subr.bf16.mxu1 %v9461_v10 }
 0xb90   :  { %8091 = vmatpush3.bf16.msra.mxu1 %v9461_v10 }
 0xb91   :  { %8093 = vmatprep.subr.bf16.mxu1 %v9481_v49 }
 0xb94   :  { %8095 = vmatpush3.bf16.msra.mxu1 %v9481_v49 }
 0xb95   :  { %8097 = vmatprep.subr.bf16.mxu1 %v9501_v2 }
 0xb98   :  { %8099 = vmatpush3.bf16.msra.mxu1 %v9501_v2 }
 0xb99   :  { %8101 = vmatprep.subr.bf16.mxu1 %v9527_v28 }
 0xb9c   :  { %8103 = vmatpush3.bf16.msra.mxu1 %v9527_v28 }
 0xb9f   :  { %7430 = vmatmul.mubr.f32.vlgmr.msra.gmra.mrb[12].mxu1 %v9680_v52 }
 0xc72   :  { %v7431_v6 = vpop.f32.mrb[12].mxu1 }
 0xc73   :  { %v5563_v5 = vadd.f32 %v7431_v6, %v9362_v30  ;;  %v5552_v56 = vpop.f32.mrb[13].mxu1  ;;  %v8114_v6 = vpack.c.bf16 %v5725_v21, %v5713_v39 }
 0xc74   :  { %v5562_v15 = vadd.f32 %v5552_v56, %v9359_v1  ;;  %v5748_v56 = vsub.f32 %v9849_v22, %v5747_v63 }
 0xc75   :  { %v5567_v10 = vsel %vm1043_vm4, %v5563_v5, 0.0 }
 0xc76   :  { %5568 = vadd.xlane.f32.xlu0 %v5567_v10  ;;  %v5564_v49 = vsel %vm1043_vm4, %v5562_v15, 0.0  ;;  %v5743_v10 = vand.u32 4294901760, %v5742_v25 }
 0xc77   :  { %5565 = vadd.xlane.f32.xlu1 %v5564_v49 }
 0xd03   :  { %v5569_v59 = vpop.xlane.xlu0 %5568 }
 0xd04   :  { %v5571_v2 = vmul.f32 0.03125, %v5569_v59  ;;  %v5566_v7 = vpop.xlane.xlu1 %5565  ;;  %v5749_v59 = vand.u32 4294901760, %v5748_v56 }
 0xd05   :  { %v5570_v50 = vmul.f32 0.03125, %v5566_v7 }
 0xd06   :  { %v9790_v60 = vsub.f32 %v5563_v5, %v5571_v2  ;;  %v5736_v5 = vsub.f32 %v9847_v47, %v5735_v11 }
 0xd07   :  { %v9792_v28 = vsub.f32 %v5562_v15, %v5570_v50  ;;  %v5731_v15 = vand.u32 4294901760, %v5730_v62  ;;  %v8120_v50 = vpack.c.bf16 %v9828_v18, %v9826_v46  ;;  %v6243_v46 = vld [vmem:[%s9919_s2 + $0x215] ss:$0 sm:$0xff]  ;;  %s8310_s2 = smov [#allocation2]  }
 0xd08   :  { %v5575_v30 = vmul.f32 %v9790_v60, %v9790_v60  ;;  %v5737_v49 = vand.u32 4294901760, %v5736_v5  ;;  %s6209_s23 = sshll.u32 %s8310_s2, 4  ;;  %s6210_s23 = int_to_ptr.vmem [resolvable:$true] %s6209_s23 }
 0xd09   :  { %v5574_v1 = vmul.f32 %v9792_v28, %v9792_v28  ;;  %v8116_v2 = vpack.c.bf16 %v5743_v10, %v5731_v15  ;;  %s8283_s24 = scalar_lea.vmem %s6210_s23, 512  ;;  %p8288_p1 = scmp.lt.s32.totalorder %s6210_s23, %s6210_s23 }
 0xd0a   :  { %v5579_v52 = vsel %vm1043_vm4, %v5575_v30, 0.0  ;;  %v8118_v7 = vpack.c.bf16 %v5749_v59, %v5737_v49  ;;  %v8122_v30 = vpack.c.bf16 %v9834_v26, %v9830_v53  ;;  %p8284_p0 = scmp.ne.s32.totalorder %s6210_s23, %s8283_s24  ;;  %p8289_p2 = scmp.lt.s32.totalorder %s8283_s24, %s8283_s24 }
 0xd0b   :  { %5580 = vadd.xlane.f32.xlu0 %v5579_v52  ;;  %v5576_v61 = vsel %vm1043_vm4, %v5574_v1, 0.0  ;;  %v8124_v1 = vpack.c.bf16 %v9841_v13, %v9838_v14  ;;  %v8126_v52 = vpack.c.bf16 %v9849_v22, %v9847_v47 }
 0xd0c   :  { %5577 = vadd.xlane.f32.xlu1 %v5576_v61  ;;  %v8136_v61 = vpack.c.bf16 %v5717_v51, %v5705_v42  ;;  %p8290_p3 = por %p8289_p2, %p8288_p1 }
 0xd0e   :  { %p8291_p4 = pnand %p8290_p3, %p8284_p0 }
 0xd98   :  { %v5581_v54 = vpop.xlane.xlu0 %5580 }
 0xd99   :  { %v5583_v23 = vmul.f32 0.03125, %v5581_v54  ;;  %v5578_v16 = vpop.xlane.xlu1 %5577 }
 0xd9a   :  { %v5582_v38 = vmul.f32 0.03125, %v5578_v16 }
 0xd9b   :  { %v5585_v17 = vadd.f32 1e-05, %v5583_v23 }
 0xd9c   :  { %v5584_v58 = vadd.f32 1e-05, %v5582_v38 }
 0xd9d   :  { %8279 = vrsqrt.f32 %v5585_v17 }
 0xd9e   :  { %8281 = vrsqrt.f32 %v5584_v58 }
 0xda7   :  { %v8280_v31 = vpop.eup %8279 }
 0xda8   :  { %v8282_v9 = vpop.eup %8281  ;;  %v5589_v44 = vmul.f32 %v8280_v31, %v9790_v60 }
 0xda9   :  { %v5588_v45 = vmul.f32 %v8282_v9, %v9792_v28 }
 0xdaa   :  { %v5595_v18 = vmul.f32 %v6242_v57, %v5589_v44 }
 0xdab   :  { %v5594_v53 = vmul.f32 %v6242_v57, %v5588_v45 }
 0xdac   :  { %v5601_v26 = vadd.f32 %v6243_v46, %v5595_v18 }
 0xdad   :  { %v5600_v14 = vadd.f32 %v6243_v46, %v5594_v53 }
 0xdae   :  { %v5606_v13 = vsel %vm1043_vm4, %v5601_v26, 0 }
 0xdaf   :  { %v5603_v12 = vsel %vm1043_vm4, %v5600_v14, 0  ;;  %v5692_v33 = vand.u32 4294901760, %v5606_v13 }
 0xdb0   :  { %v5681_v47 = vand.u32 4294901760, %v5603_v12 }
 0xdb1   :  { %v5693_v22 = vsub.f32 %v5606_v13, %v5692_v33 }
 0xdb2   :  { %v5682_v42 = vsub.f32 %v5603_v12, %v5681_v47 }
 0xdb3   :  { %v5694_v60 = vand.u32 4294901760, %v5693_v22 }
 0xdb4   :  { %v5683_v51 = vand.u32 4294901760, %v5682_v42 }
 0xdb5   :  { %v5695_v19 = vsub.f32 %v5693_v22, %v5694_v60 }
 0xdb6   :  { %v5684_v4 = vsub.f32 %v5682_v42, %v5683_v51 }
 0xdb7   :  { %v5696_v43 = vand.u32 4294901760, %v5695_v19 }
 0xdb8   :  { %v5685_v28 = vand.u32 4294901760, %v5684_v4 }
 0xdba   :  { %5686 = vmatmul.mubr.f32.vlgmr.msra.gmra.mrb[28].mxu0 %v5685_v28 }
 0xdbb   :  { %8115 = vmatpush1.bf16.msra.mxu0 %v8114_v6  ;;  %5691 = vmatprep.mubr.f32.mxu0 %v10081_v0 }
 0xdbc   :  { %8117 = vmatprep.subr.bf16.mxu0 %v8116_v2 }
 0xdbe   :  { %5697 = vmatmul.mubr.f32.gmra.mrb[30].mxu0 %v5696_v43 }
 0xdbf   :  { %8119 = vmatpush1.bf16.msra.mxu0 %v8118_v7  ;;  %5807 = vmatprep.mubr.f32.mxu0 %v10081_v0 }
 0xdc0   :  { %8121 = vmatprep.subr.bf16.mxu0 %v8120_v50 }
 0xdc2   :  { %5809 = vmatmul.mubr.f32.vlgmr.msra.gmra.mrb[28].mxu0 %v5681_v47 }
 0xdc3   :  { %8123 = vmatpush1.bf16.msra.mxu0 %v8122_v30  ;;  %5814 = vmatprep.mubr.f32.mxu0 %v10081_v0 }
 0xdc4   :  { %8125 = vmatprep.subr.bf16.mxu0 %v8124_v1 }
 0xdc6   :  { %5816 = vmatmul.mubr.f32.gmra.mrb[30].mxu0 %v5692_v33 }
 0xdc7   :  { %8127 = vmatpush1.bf16.msra.mxu0 %v8126_v52  ;;  %5902 = vmatprep.mubr.f32.mxu0 %v10081_v0 }
 0xdc8   :  { %8129 = vmatprep.subr.bf16.mxu0 %v9824_v35 }
 0xdca   :  { %5905 = vmatmul.mubr.f32.vlgmr.msra.gmra.mrb[28].mxu0 %v5682_v42 }
 0xdcb   :  { %8131 = vmatpush1.bf16.msra.mxu0 %v9832_v29  ;;  %5910 = vmatprep.mubr.f32.mxu0 %v10081_v0 }
 0xdcc   :  { %8133 = vmatprep.subr.bf16.mxu0 %v9836_v8 }
 0xdce   :  { %5913 = vmatmul.mubr.f32.gmra.mrb[30].mxu0 %v5693_v22 }
 0xdcf   :  { %8135 = vmatpush1.bf16.msra.mxu0 %v9845_v24  ;;  %5991 = vmatprep.mubr.f32.mxu0 %v10081_v0 }
 0xdd0   :  { %8137 = vmatprep.subr.bf16.mxu0 %v8136_v61 }
 0xdd2   :  { %5995 = vmatmul.mubr.f32.vlgmr.msra.gmra.mrb[28].mxu0 %v5683_v51 }
 0xdd3   :  { %8139 = vmatpush1.bf16.msra.mxu0 %v8138_v20  ;;  %6000 = vmatprep.mubr.f32.mxu0 %v10081_v0 }
 0xdd4   :  { %8141 = vmatprep.subr.bf16.mxu0 %v8140_v34 }
 0xdd6   :  { %6004 = vmatmul.mubr.f32.gmra.mrb[30].mxu0 %v5694_v60 }
 0xdd7   :  { %8143 = vmatpush1.bf16.msra.mxu0 %v8142_v27  ;;  %6098 = vmatprep.mubr.f32.mxu0 %v10081_v0 }
 0xdd8   :  { %8145 = vmatprep.subr.bf16.mxu0 %v9824_v35 }
 0xdda   :  { %6100 = vmatmul.mubr.f32.vlgmr.msra.gmra.mrb[28].mxu0 %v5681_v47 }
 0xddb   :  { %8147 = vmatpush1.bf16.msra.mxu0 %v9832_v29  ;;  %6105 = vmatprep.mubr.f32.mxu0 %v10081_v0 }
 0xddc   :  { %8149 = vmatprep.subr.bf16.mxu0 %v9836_v8 }
 0xdde   :  { %6107 = vmatmul.mubr.f32.gmra.mrb[30].mxu0 %v5692_v33 }
 0xddf   :  { %8151 = vmatpush1.bf16.msra.mxu0 %v9845_v24  ;;  %6185 = vmatprep.mubr.f32.mxu0 %v10081_v0 }
 0xde2   :  { %6187 = vmatmul.mubr.f32.vlgmr.msra.gmra.mrb[28].mxu0 %v5681_v47 }
 0xde3   :  { %6192 = vmatprep.mubr.f32.mxu0 %v10081_v0 }
 0xde6   :  { %6194 = vmatmul.mubr.f32.gmra.mrb[30].mxu0 %v5692_v33 }
 0xeb5   :  { %v6188_v32 = vpop.f32.mrb[28].mxu0 }
 0xeb6   :  { %6200 = vst [vmem:[#allocation2] sm:$0xff] %v6188_v32  ;;  %v6190_v41 = vpop.f32.mrb[29].mxu0 }
 0xeb7   :  { %6201 = vst [vmem:[#allocation2 + $0x8] sm:$0xff] %v6190_v41 }
 0xeb9   :  { %v6195_v35 = vpop.f32.mrb[30].mxu0 }
 0xeba   :  { %6202 = vst [vmem:[#allocation2 + $0x10] sm:$0xff] %v6195_v35  ;;  %v6197_v29 = vpop.f32.mrb[31].mxu0 }
 0xebb   :  { %6203 = vst [vmem:[#allocation2 + $0x18] sm:$0xff] %v6197_v29 }
 0xebc   :  { %8294 = shalt.err (!%p8291_p4)
}
 0xebd   :  { %s8295_s0 = scalar_lea.hbm %s9921_s4, 512 }
 0xebe   :  { %p8296_p5 = scmp.ne.s32.totalorder %s9921_s4, %s8295_s0  ;;  %p8299_p6 = scmp.lt.u32.totalorder %s8295_s0, %s9921_s4 }
 0xec0   :  { %p8301_p7 = pnand %p8299_p6, %p8296_p5 }
 0xec2   :  { %8304 = shalt.err (!%p8301_p7)
}
 0xec3   :  { %s8311_s5 = smov 256   ;;  %s8312_s6 = smov 16  }
 0xec4   :  { %6215 = dma.vmem_to_hbm [thread:$0]  %s6210_s23, 512, %s9921_s4, [#allocation3], %s8311_s5, %s8311_s5, %s8312_s6  }
 0xec5   :  { %8305 = dma.done.wait [#allocation3], 512  }
 0xec6   :  { %8306 = vsyncadd [#allocation3], 4294966784 }
 0xec7   :  { %6219 = vsyncpa [#allocation3], 1 }

</bundles_post_ra>
